<compile_context>
chip_gen: v6e
topology: v6e:2x2x1
jax: 0.10.0
libtpu: 0.0.40
codegen_flags: <defaults>
</compile_context>

<pallas_src>
import numpy as np
import jax
import jax.numpy as jnp
from jax.experimental import pallas as pl
from jax.experimental.pallas import tpu as pltpu


def _round_up(x, m):
    return ((x + m - 1) // m) * m


# VMEM working-set budget (fits v7x's 64 MiB/TC with headroom; conservative but
# near-roofline on v5e/v6e since the kernel is HBM-bound at tm>=256 already).
_VMEM_BUDGET = 40 * 1024 * 1024
_VMEM_LIMIT = 48 * 1024 * 1024


def _choose_tiling(n, o):
    """Pick (tm, n_pad): tm a multiple of 128 chosen from the VMEM budget."""
    n128 = _round_up(max(n, 1), 128)
    for tm in (512, 256, 128):
        if tm > n128:
            continue
        n_pad = _round_up(n, tm)          # multiple of tm and of 128
        need = (2 * n_pad * o * 2         # resident XW (bf16, double-buffered)
                + 2 * tm * n_pad * 1      # A int8 row tile, double-buffered
                + tm * n_pad * 2          # in-kernel bf16 copy of the A tile
                + 2 * tm * o * 2          # emb out tile, double-buffered
                + 2 * tm * o * 4)         # f32 y + slack
        if need <= _VMEM_BUDGET:
            return tm, n_pad
    # TODO(synk): for very large graphs (resident XW or a 128-row tile alone
    # exceeding the budget) add a K-tile grid axis over n_pad with an f32
    # accumulator scratch instead of this fallback.
    return 128, _round_up(n, 128)


# ----------------------------- Pallas kernels -----------------------------

def gcn_forward_all(xw_scaled, a_int8, dinv_rows, b, n_valid, tm):
    """Net2 forward (GCNConv + ReLU) for all 4 metapaths.

    xw_scaled: (4, N_pad, O)    bf16  = diag(dinv_s) @ X @ W_s  (precomputed)
    a_int8:    (4, N_pad, N_pad) int8 = raw (A_s + I), zero-padded
    dinv_rows: (4, N_pad, 1)    f32   = D_s^{-1/2} (row scale)
    b:         (4, 1, O)        f32
    Returns: emb (4, N_pad, O) bf16, colsum (4, 1, O) f32 (sum over valid rows).
    """
    _, n_pad, o = xw_scaled.shape
    r_steps = n_pad // tm
    last = r_steps - 1

    def gcn_kernel(xw_ref, a_ref, dinv_ref, b_ref, emb_ref, colsum_ref):
        r = pl.program_id(1)

        @pl.when(r == 0)
        def _init():
            colsum_ref[...] = jnp.zeros_like(colsum_ref)

        # int8 0/1 adjacency tile -> bf16 (via f32; cheap VPU filler), MXU matmul
        # against the resident bf16 XW, f32 accumulation.
        a = a_ref[0].astype(jnp.float32).astype(jnp.bfloat16)      # (tm, n_pad)
        y = jnp.dot(a, xw_ref[0], preferred_element_type=jnp.float32)  # (tm, O)
        y = y * dinv_ref[0]                                         # left D^{-1/2}
        y = jnp.maximum(y + b_ref[0], 0.0)

        emb_ref[0] = y.astype(emb_ref.dtype)

        # Pooled column sum; padded rows can only appear in the last tile,
        # so mask only there (padded emb rows are discarded by the gather).
        if n_pad == n_valid:
            colsum_ref[0] += jnp.sum(y, axis=0, keepdims=True)
        else:
            @pl.when(r != last)
            def _full():
                colsum_ref[0] += jnp.sum(y, axis=0, keepdims=True)

            @pl.when(r == last)
            def _masked():
                rows = r * tm + jax.lax.broadcasted_iota(jnp.int32, (tm, 1), 0)
                ym = jnp.where(rows < n_valid, y, 0.0)
                colsum_ref[0] += jnp.sum(ym, axis=0, keepdims=True)

    return pl.pallas_call(
        gcn_kernel,
        out_shape=(
            jax.ShapeDtypeStruct((4, n_pad, o), jnp.bfloat16),  # embeddings
            jax.ShapeDtypeStruct((4, 1, o), jnp.float32),       # column sums
        ),
        grid_spec=pltpu.PrefetchScalarGridSpec(
            num_scalar_prefetch=0,
            grid=(4, r_steps),
            in_specs=[
                pl.BlockSpec((1, n_pad, o), lambda s, r: (s, 0, 0)),   # XW_s (resident)
                pl.BlockSpec((1, tm, n_pad), lambda s, r: (s, r, 0)),  # A row tile (int8)
                pl.BlockSpec((1, tm, 1), lambda s, r: (s, r, 0)),      # dinv rows
                pl.BlockSpec((1, 1, o), lambda s, r: (s, 0, 0)),       # bias
            ],
            out_specs=(
                pl.BlockSpec((1, tm, o), lambda s, r: (s, r, 0)),      # emb tile
                pl.BlockSpec((1, 1, o), lambda s, r: (s, 0, 0)),       # pooled sum
            ),
        ),
        compiler_params=pltpu.CompilerParams(
            dimension_semantics=("parallel", "arbitrary"),
            vmem_limit_bytes=_VMEM_LIMIT,
        ),
    )(xw_scaled, a_int8, dinv_rows, b)


def combine(betas, emb, tm):
    """Row-tiled beta-weighted sum over the 4 metapath embeddings.

    betas: (2, 4) f32 (beta0 row 0, beta1 row 1) -> SMEM
    emb:   (4, N_pad, O) bf16
    Returns h0_all, h1_all: (N_pad, O) f32.
    """
    _, n_pad, o = emb.shape
    r_steps = n_pad // tm

    def combine_kernel(beta_ref, emb_ref, h0_ref, h1_ref):
        # Per-metapath slice reads keep only one (tm, O) f32 tile live at a time.
        e0 = emb_ref[0].astype(jnp.float32)
        acc0 = beta_ref[0, 0] * e0
        acc1 = beta_ref[1, 0] * e0
        for s in range(1, 4):
            es = emb_ref[s].astype(jnp.float32)
            acc0 = acc0 + beta_ref[0, s] * es
            acc1 = acc1 + beta_ref[1, s] * es
        h0_ref[...] = acc0
        h1_ref[...] = acc1

    return pl.pallas_call(
        combine_kernel,
        out_shape=(
            jax.ShapeDtypeStruct((n_pad, o), jnp.float32),
            jax.ShapeDtypeStruct((n_pad, o), jnp.float32),
        ),
        grid_spec=pltpu.PrefetchScalarGridSpec(
            num_scalar_prefetch=0,
            grid=(r_steps,),
            in_specs=[
                pl.BlockSpec(memory_space=pltpu.MemorySpace.SMEM),     # betas
                pl.BlockSpec((4, tm, o), lambda r: (0, r, 0)),         # emb tile
            ],
            out_specs=(
                pl.BlockSpec((tm, o), lambda r: (r, 0)),
                pl.BlockSpec((tm, o), lambda r: (r, 0)),
            ),
        ),
        compiler_params=pltpu.CompilerParams(
            dimension_semantics=("parallel",),
        ),
    )(betas, emb)


# ------------------------------ JAX wrapper --------------------------------

def hmgcn_forward(feature, adjs, node_types, params):
    """feature: [N, F]; adjs: [4, N, N] raw 0/1 adjacencies; node_types: np array."""
    n, _ = feature.shape
    o = params["gcn_w"].shape[-1]

    tm, n_pad = _choose_tiling(n, o)
    pad_n = n_pad - n

    # GCNConv normalization split: A_hat = diag(dinv) (A + I) diag(dinv).
    # Keep (A + I) as 0/1 int8 (the N^2 HBM stream), fold the right dinv into
    # XW, apply the left dinv per output row inside the kernel.
    a_loops = adjs + jnp.eye(n, dtype=jnp.float32)[None]          # (4, N, N)
    deg = jnp.sum(a_loops, axis=2)                                # (4, N)
    dinv = jnp.where(deg > 0, jax.lax.rsqrt(deg), 0.0)            # (4, N)

    a_int8 = jnp.pad(a_loops.astype(jnp.int8),
                     ((0, 0), (0, pad_n), (0, pad_n)))            # (4, N_pad, N_pad)
    dinv_pad = jnp.pad(dinv, ((0, 0), (0, pad_n)))                # (4, N_pad)

    x_pad = jnp.pad(feature, ((0, pad_n), (0, 0)))                # (N_pad, F)
    xw = jnp.einsum('nf,sfo->sno', x_pad, params["gcn_w"])        # (4, N_pad, O) f32
    xw_scaled = (dinv_pad[:, :, None] * xw).astype(jnp.bfloat16)  # right D^{-1/2}

    emb, colsum = gcn_forward_all(
        xw_scaled, a_int8, dinv_pad[:, :, None], params["gcn_b"], n, tm)

    # Mean-pool + sigmoid + fc1/fc2 logits + softmax over the 4 metapaths.
    h_pool = jax.nn.sigmoid(colsum[:, 0, :] / float(n))           # (4, O)
    s0 = h_pool @ params["fc1_w"].T                               # (4, 1)
    s1 = h_pool @ params["fc2_w"].T                               # (4, 1)
    beta0 = jax.nn.softmax(s0[:, 0], axis=0)                      # (4,)
    beta1 = jax.nn.softmax(s1[:, 0], axis=0)                      # (4,)
    betas = jnp.stack([beta0, beta1], axis=0)                     # (2, 4)

    h0_all, h1_all = combine(betas, emb, tm)                      # each (N_pad, O)

    # Static row gather by node type, then concat (type-0 rows, then type-1).
    idx0 = np.where(node_types == 0)[0]
    idx1 = np.where(node_types == 1)[0]
    h0 = h0_all[jnp.asarray(idx0), :]
    h1 = h1_all[jnp.asarray(idx1), :]
    return jnp.concatenate([h0, h1], axis=0)


def hmgcn_reference(feature, adjs, node_types, params):
    """Pure-JAX f32 reference mirroring the PyTorch module."""
    n = feature.shape[0]
    embs, b0, b1 = [], [], []
    for s in range(4):
        a = adjs[s] + jnp.eye(n, dtype=jnp.float32)
        deg = jnp.sum(a, axis=1)
        dinv = jnp.where(deg > 0, jax.lax.rsqrt(deg), 0.0)
        a_hat = a * dinv[:, None] * dinv[None, :]
        x = jax.nn.relu(a_hat @ (feature @ params["gcn_w"][s]) + params["gcn_b"][s])
        embs.append(x)
        hp = jax.nn.sigmoid(jnp.mean(x, axis=0))
        b0.append(jnp.dot(hp, params["fc1_w"][0]))
        b1.append(jnp.dot(hp, params["fc2_w"][0]))
    beta0 = jax.nn.softmax(jnp.stack(b0))
    beta1 = jax.nn.softmax(jnp.stack(b1))
    idx0 = np.where(node_types == 0)[0]
    idx1 = np.where(node_types == 1)[0]
    h0 = sum(beta0[s] * embs[s][idx0] for s in range(4))
    h1 = sum(beta1[s] * embs[s][idx1] for s in range(4))
    return jnp.concatenate([h0, h1], axis=0)


# ------------------------------ parameters ---------------------------------

def init_params(key, nfeat, out):
    ks = jax.random.split(key, 10)
    gcn_w = jnp.stack([
        jax.random.normal(ks[i], (nfeat, out), jnp.float32)
        * (1.0 / jnp.sqrt(nfeat)) for i in range(4)
    ], axis=0)                                            # (4, F, O)
    gcn_b = jnp.stack([
        0.01 * jax.random.normal(ks[4 + i], (1, out), jnp.float32)
        for i in range(4)
    ], axis=0)                                            # (4, 1, O)
    # fc1/fc2 are bias-free in the reference (nn.Linear(out, 1, bias=False)).
    fc1_w = jax.random.normal(ks[8], (1, out), jnp.float32) / jnp.sqrt(out)
    fc2_w = jax.random.normal(ks[9], (1, out), jnp.float32) / jnp.sqrt(out)
    return {"gcn_w": gcn_w, "gcn_b": gcn_b, "fc1_w": fc1_w, "fc2_w": fc2_w}


# --------------------------------- main -------------------------------------

if __name__ == "__main__":
    # 300 nodes -> n_pad = 512 with tm = 256: exercises multiple row tiles,
    # the last-tile padded-row mask, and all 4 metapaths.
    N, NFEAT, OUT = 300, 32, 128

    key = jax.random.PRNGKey(0)
    k_feat, k_adj, k_par = jax.random.split(key, 3)

    feature = jax.random.normal(k_feat, (N, NFEAT), jnp.float32)

    # 4 deterministic random symmetric 0/1 adjacencies (dense stand-in for the
    # scipy sparse A[i][0] matrices in the reference).
    adj_keys = jax.random.split(k_adj, 4)
    adjs = []
    for i in range(4):
        m = (jax.random.uniform(adj_keys[i], (N, N)) < 0.05).astype(jnp.float32)
        m = jnp.clip(m + m.T, 0.0, 1.0)
        m = m * (1.0 - jnp.eye(N, dtype=jnp.float32))
        adjs.append(m)
    adjs = jnp.stack(adjs, axis=0)

    node_types = np.array([0] * 180 + [1] * 120, dtype=np.int32)

    params = init_params(k_par, NFEAT, OUT)

    h = hmgcn_forward(feature, adjs, node_types, params)
    h = jax.block_until_ready(h)
    assert h.shape == (N, OUT) and h.dtype == jnp.float32
    assert bool(jnp.all(jnp.isfinite(h)))

    # Loose cross-check vs pure-JAX f32 reference (bf16 operands inside kernel).
    h_ref = jax.block_until_ready(hmgcn_reference(feature, adjs, node_types, params))
    scale = float(jnp.max(jnp.abs(h_ref))) + 1e-6
    max_rel = float(jnp.max(jnp.abs(h - h_ref))) / scale
    assert max_rel < 5e-2, f"mismatch vs reference: {max_rel}"

    print("KERNEL_OK")
</pallas_src>

<mosaic_0001>
module attributes {stable_mosaic.version = 11 : i64} {
  func.func @gcn_kernel(%arg0: i32, %arg1: i32, %arg2: memref<1x512x128xbf16, #tpu.memory_space<vmem>>, %arg3: memref<1x256x512xi8, #tpu.memory_space<vmem>>, %arg4: memref<1x256x1xf32, #tpu.memory_space<vmem>>, %arg5: memref<1x1x128xf32, #tpu.memory_space<vmem>>, %arg6: memref<1x256x128xbf16, #tpu.memory_space<vmem>>, %arg7: memref<1x1x128xf32, #tpu.memory_space<vmem>>) attributes {dimension_semantics = [#tpu.dimension_semantics<parallel>, #tpu.dimension_semantics<arbitrary>], iteration_bounds = array<i64: 4, 2>, scalar_prefetch = 0 : i64, scratch_operands = 0 : i64, tpu.core_type = #tpu.core_type<tc>, window_params = [{transform_indices = @transform_0, window_bounds = array<i64: 1, 512, 128>}, {transform_indices = @transform_1, window_bounds = array<i64: 1, 256, 512>}, {transform_indices = @transform_2, window_bounds = array<i64: 1, 256, 1>}, {transform_indices = @transform_3, window_bounds = array<i64: 1, 1, 128>}, {transform_indices = @transform_4, window_bounds = array<i64: 1, 256, 128>}, {transform_indices = @transform_5, window_bounds = array<i64: 1, 1, 128>}]} {
    %c0_i32 = arith.constant 0 : i32
    %0 = arith.cmpi eq, %arg1, %c0_i32 : i32
    %1 = arith.extui %0 : i1 to i32
    %c0_i32_0 = arith.constant 0 : i32
    %2 = arith.cmpi ne, %1, %c0_i32_0 : i32
    scf.if %2 {
      %cst_19 = arith.constant 0.000000e+00 : f32
      %30 = vector.broadcast %cst_19 : f32 to vector<1x1x128xf32>
      %c0_20 = arith.constant 0 : index
      %c0_21 = arith.constant 0 : index
      %c0_22 = arith.constant 0 : index
      %31 = vector.load %arg7[%c0_20, %c0_21, %c0_22] : memref<1x1x128xf32, #tpu.memory_space<vmem>>, vector<1x1x128xf32>
      tpu.vector_store %arg7[%c0_20, %c0_21, %c0_22], %30 {strides = array<i32>} : memref<1x1x128xf32, #tpu.memory_space<vmem>>, vector<1x1x128xf32>,
    } else {
    }
    %c0 = arith.constant 0 : index
    %c0_1 = arith.constant 0 : index
    %c0_2 = arith.constant 0 : index
    %3 = vector.load %arg3[%c0, %c0_1, %c0_2] : memref<1x256x512xi8, #tpu.memory_space<vmem>>, vector<1x256x512xi8>
    %4 = vector.shape_cast %3 : vector<1x256x512xi8> to vector<256x512xi8>
    %5 = arith.sitofp %4 : vector<256x512xi8> to vector<256x512xf32>
    %6 = arith.truncf %5 : vector<256x512xf32> to vector<256x512xbf16>
    %c0_3 = arith.constant 0 : index
    %c0_4 = arith.constant 0 : index
    %c0_5 = arith.constant 0 : index
    %7 = vector.load %arg2[%c0_3, %c0_4, %c0_5] : memref<1x512x128xbf16, #tpu.memory_space<vmem>>, vector<1x512x128xbf16>
    %8 = vector.shape_cast %7 : vector<1x512x128xbf16> to vector<512x128xbf16>
    %cst = arith.constant dense<0.000000e+00> : vector<256x128xf32>
    %9 = tpu.matmul %6, %8, %cst {dimension_numbers = #tpu.dot_dimension_numbers<[1], [0], [0], [1], [0, 0, 1, 1], [], []>} : vector<256x512xbf16>, vector<512x128xbf16>, vector<256x128xf32> -> vector<256x128xf32>
    %c0_6 = arith.constant 0 : index
    %c0_7 = arith.constant 0 : index
    %c0_8 = arith.constant 0 : index
    %10 = vector.load %arg4[%c0_6, %c0_7, %c0_8] : memref<1x256x1xf32, #tpu.memory_space<vmem>>, vector<1x256x1xf32>
    %11 = vector.shape_cast %10 : vector<1x256x1xf32> to vector<256x1xf32>
    %12 = vector.broadcast %11 : vector<256x1xf32> to vector<256x128xf32>
    %13 = arith.mulf %9, %12 : vector<256x128xf32>
    %c0_9 = arith.constant 0 : index
    %c0_10 = arith.constant 0 : index
    %c0_11 = arith.constant 0 : index
    %14 = vector.load %arg5[%c0_9, %c0_10, %c0_11] : memref<1x1x128xf32, #tpu.memory_space<vmem>>, vector<1x1x128xf32>
    %15 = vector.shape_cast %14 : vector<1x1x128xf32> to vector<1x128xf32>
    %16 = vector.broadcast %15 : vector<1x128xf32> to vector<256x128xf32>
    %17 = arith.addf %13, %16 : vector<256x128xf32>
    %cst_12 = arith.constant 0.000000e+00 : f32
    %18 = vector.broadcast %cst_12 : f32 to vector<256x128xf32>
    %19 = arith.maximumf %17, %18 : vector<256x128xf32>
    %20 = arith.truncf %19 : vector<256x128xf32> to vector<256x128xbf16>
    %c0_13 = arith.constant 0 : index
    %c0_14 = arith.constant 0 : index
    %c0_15 = arith.constant 0 : index
    %21 = vector.load %arg6[%c0_13, %c0_14, %c0_15] : memref<1x256x128xbf16, #tpu.memory_space<vmem>>, vector<1x256x128xbf16>
    %22 = vector.shape_cast %21 : vector<1x256x128xbf16> to vector<256x128xbf16>
    %23 = vector.shape_cast %20 : vector<256x128xbf16> to vector<1x256x128xbf16>
    tpu.vector_store %arg6[%c0_13, %c0_14, %c0_15], %23 {strides = array<i32>} : memref<1x256x128xbf16, #tpu.memory_space<vmem>>, vector<1x256x128xbf16>,
    %c1_i32 = arith.constant 1 : i32
    %24 = arith.cmpi ne, %arg1, %c1_i32 : i32
    %25 = arith.extui %24 : i1 to i32
    %c0_i32_16 = arith.constant 0 : i32
    %26 = arith.cmpi ne, %25, %c0_i32_16 : i32
    scf.if %26 {
      %c0_19 = arith.constant 0 : index
      %c0_20 = arith.constant 0 : index
      %c0_21 = arith.constant 0 : index
      %30 = vector.load %arg7[%c0_19, %c0_20, %c0_21] : memref<1x1x128xf32, #tpu.memory_space<vmem>>, vector<1x1x128xf32>
      %31 = vector.shape_cast %30 : vector<1x1x128xf32> to vector<1x128xf32>
      %cst_22 = arith.constant dense<0.000000e+00> : vector<128xf32>
      %32 = vector.multi_reduction <add>, %19, %cst_22 [0] : vector<256x128xf32> to vector<128xf32>
      %33 = vector.shape_cast %32 : vector<128xf32> to vector<1x128xf32>
      %34 = arith.addf %31, %33 : vector<1x128xf32>
      %c0_23 = arith.constant 0 : index
      %c0_24 = arith.constant 0 : index
      %c0_25 = arith.constant 0 : index
      %35 = vector.load %arg7[%c0_23, %c0_24, %c0_25] : memref<1x1x128xf32, #tpu.memory_space<vmem>>, vector<1x1x128xf32>
      %36 = vector.shape_cast %35 : vector<1x1x128xf32> to vector<1x128xf32>
      %37 = vector.shape_cast %34 : vector<1x128xf32> to vector<1x1x128xf32>
      tpu.vector_store %arg7[%c0_23, %c0_24, %c0_25], %37 {strides = array<i32>} : memref<1x1x128xf32, #tpu.memory_space<vmem>>, vector<1x1x128xf32>,
    } else {
    }
    %c1_i32_17 = arith.constant 1 : i32
    %27 = arith.cmpi eq, %arg1, %c1_i32_17 : i32
    %28 = arith.extui %27 : i1 to i32
    %c0_i32_18 = arith.constant 0 : i32
    %29 = arith.cmpi ne, %28, %c0_i32_18 : i32
    scf.if %29 {
      %c256_i32 = arith.constant 256 : i32
      %30 = arith.muli %arg1, %c256_i32 : i32
      %31 = tpu.iota {dimensions = array<i32: 0>} : vector<256x1xi32>
      %32 = vector.broadcast %30 : i32 to vector<256x1xi32>
      %33 = arith.addi %32, %31 : vector<256x1xi32>
      %c300_i32 = arith.constant 300 : i32
      %34 = vector.broadcast %c300_i32 : i32 to vector<256x1xi32>
      %35 = arith.cmpi slt, %33, %34 : vector<256x1xi32>
      %cst_19 = arith.constant 0.000000e+00 : f32
      %36 = vector.shape_cast %35 : vector<256x1xi1> to vector<256x1xi1>
      %37 = vector.broadcast %36 : vector<256x1xi1> to vector<256x128xi1>
      %38 = vector.broadcast %cst_19 : f32 to vector<256x128xf32>
      %39 = arith.select %37, %19, %38 : vector<256x128xi1>, vector<256x128xf32>
      %c0_20 = arith.constant 0 : index
      %c0_21 = arith.constant 0 : index
      %c0_22 = arith.constant 0 : index
      %40 = vector.load %arg7[%c0_20, %c0_21, %c0_22] : memref<1x1x128xf32, #tpu.memory_space<vmem>>, vector<1x1x128xf32>
      %41 = vector.shape_cast %40 : vector<1x1x128xf32> to vector<1x128xf32>
      %cst_23 = arith.constant dense<0.000000e+00> : vector<128xf32>
      %42 = vector.multi_reduction <add>, %39, %cst_23 [0] : vector<256x128xf32> to vector<128xf32>
      %43 = vector.shape_cast %42 : vector<128xf32> to vector<1x128xf32>
      %44 = arith.addf %41, %43 : vector<1x128xf32>
      %c0_24 = arith.constant 0 : index
      %c0_25 = arith.constant 0 : index
      %c0_26 = arith.constant 0 : index
      %45 = vector.load %arg7[%c0_24, %c0_25, %c0_26] : memref<1x1x128xf32, #tpu.memory_space<vmem>>, vector<1x1x128xf32>
      %46 = vector.shape_cast %45 : vector<1x1x128xf32> to vector<1x128xf32>
      %47 = vector.shape_cast %44 : vector<1x128xf32> to vector<1x1x128xf32>
      tpu.vector_store %arg7[%c0_24, %c0_25, %c0_26], %47 {strides = array<i32>} : memref<1x1x128xf32, #tpu.memory_space<vmem>>, vector<1x1x128xf32>,
    } else {
    }
    return
  }
  func.func @transform_0(%arg0: i32, %arg1: i32) -> (i32, i32, i32) {
    %c0_i32 = arith.constant 0 : i32
    %c0_i32_0 = arith.constant 0 : i32
    %c0_i32_1 = arith.constant 0 : i32
    return %arg0, %c0_i32, %c0_i32_0 : i32, i32, i32
  }
  func.func @transform_1(%arg0: i32, %arg1: i32) -> (i32, i32, i32) {
    %c0_i32 = arith.constant 0 : i32
    %c0_i32_0 = arith.constant 0 : i32
    return %arg0, %arg1, %c0_i32 : i32, i32, i32
  }
  func.func @transform_2(%arg0: i32, %arg1: i32) -> (i32, i32, i32) {
    %c0_i32 = arith.constant 0 : i32
    %c0_i32_0 = arith.constant 0 : i32
    return %arg0, %arg1, %c0_i32 : i32, i32, i32
  }
  func.func @transform_3(%arg0: i32, %arg1: i32) -> (i32, i32, i32) {
    %c0_i32 = arith.constant 0 : i32
    %c0_i32_0 = arith.constant 0 : i32
    %c0_i32_1 = arith.constant 0 : i32
    return %arg0, %c0_i32, %c0_i32_0 : i32, i32, i32
  }
  func.func @transform_4(%arg0: i32, %arg1: i32) -> (i32, i32, i32) {
    %c0_i32 = arith.constant 0 : i32
    %c0_i32_0 = arith.constant 0 : i32
    return %arg0, %arg1, %c0_i32 : i32, i32, i32
  }
  func.func @transform_5(%arg0: i32, %arg1: i32) -> (i32, i32, i32) {
    %c0_i32 = arith.constant 0 : i32
    %c0_i32_0 = arith.constant 0 : i32
    %c0_i32_1 = arith.constant 0 : i32
    return %arg0, %c0_i32, %c0_i32_0 : i32, i32, i32
  }
}

</mosaic_0001>

<bundles_post_ra>
// kernel: tpu_custom_call.1
= control target key start
LH: loop header
LB: loop body
LE: loop exit
PB: predicated region body
PF: predicated region fallthrough
CT: control target
= control target key end

     0   :  { %s3448_s0 = inlined_call_operand.hbm [shape: bf16[4,512,128], index: 0, kind: input, shape index: {}]   ;;  %s3449_s1 = inlined_call_operand.vmem [shape: s8[4,512,512], index: 1, kind: input, shape index: {}]   ;;  %s3450_s2 = inlined_call_operand.vmem [shape: f32[4,512,1], index: 2, kind: input, shape index: {}]   ;;  %s3451_s3 = inlined_call_operand.vmem [shape: f32[4,1,128], index: 3, kind: input, shape index: {}]   ;;  %s3452_s4 = inlined_call_operand.hbm [shape: bf16[4,512,128], index: 4, kind: output, shape index: {0}]   ;;  %s3453_s5 = inlined_call_operand.hbm [shape: f32[4,1,128], index: 5, kind: output, shape index: {1}]  }
   0x1   :  { %3471 = sst [smem:[#allocation26_spill]] %s3448_s0 }
   0x2   :  { %3472 = sst [smem:[#allocation27_spill]] %s3453_s5 }
   0x3   :  { %11 = vsyncpa [#allocation3], 0 }
   0x4   :  { %13 = vsyncpa [#allocation3 + $0x1], 0 }
   0x5   :  { %14 = vsyncpa [#allocation4], 0 }
   0x6   :  { %16 = vsyncpa [#allocation4 + $0x1], 0 }
   0x7   :  { %17 = vsyncpa [#allocation7], 0 }
   0x8   :  { %19 = vsyncpa [#allocation7 + $0x1], 0  ;;  %s2782_s18 = smov 0   ;;  %s2784_s19 = smov 0  }
   0x9   :  { %s2786_s20 = smov 0   ;;  %s2788_s21 = smov 0  }
   0xa   :  { %s2790_s22 = smov 0   ;;  %s2792_s23 = smov 0  }
   0xb   :  { %s2794_s24 = smov 0   ;;  %s2796_s25 = smov 0  }
   0xc   :  { %s2798_s26 = smov 0   ;;  %s2800_s27 = smov 0  }
   0xd   :  { %s2802_s28 = smov 0  }
   0xe LB: > { %3473 = sst [smem:[#allocation11_spill]] %s2701_s18  ;;  %s1971_s29 = sadd.s32 4294967295, %s2741_s28   ;;  %s2741_s28 = sphi %s2802_s28, %s25_s28   ;;  %s2737_s27 = sphi %s2800_s27, %s3514_s27   ;;  %s2733_s26 = sphi %s2798_s26, %s3513_s26   ;;  %s2729_s25 = sphi %s2796_s25, %s3512_s25   ;;  %s2725_s24 = sphi %s2794_s24, %s3511_s24   ;;  %s2721_s23 = sphi %s2792_s23, %s3510_s23   ;;  %s2717_s22 = sphi %s2790_s22, %s3518_s22   ;;  %s2713_s21 = sphi %s2788_s21, %s3517_s21   ;;  %s2709_s20 = sphi %s2786_s20, %s3507_s20   ;;  %s2705_s19 = sphi %s2784_s19, %s3516_s19   ;;  %s2701_s18 = sphi %s2782_s18, %s3515_s18  }
   0xf   : > { %3474 = sst [smem:[#allocation12_spill]] %s2709_s20  ;;  %s1972_s30 = sadd.s32 4294967294, %s2741_s28  }
  0x10   : > { %3475 = sst [smem:[#allocation13_spill]] %s2713_s21  ;;  %s34_s6 = sadd.s32 1, %s2733_s26 }
  0x11   : > { %3476 = sst [smem:[#allocation14_spill]] %s2717_s22  ;;  %s37_s7 = sadd.s32 1, %s2737_s27 }
  0x12   : > { %3477 = sst [smem:[#allocation15_spill]] %s2721_s23  ;;  %p35_p0 = scmp.ge.s32.totalorder %s34_s6, 2 }
  0x13   : > { %3478 = sst [smem:[#allocation16_spill]] %s2733_s26  ;;  %s44_s8 = sadd.s32 1, %s2721_s23 }
  0x14   : > { %3479 = sst [smem:[#allocation17_spill]] %s2737_s27  ;;  %p51_p1 = scmp.ne.s32.totalorder %s2721_s23, %s2717_s22 }
  0x15   : > { %3480 = sst [smem:[#allocation18_spill]] %s2741_s28  ;;  %p52_p2 = scmp.eq.s32.totalorder %s2741_s28, 0 }
  0x16   : > { %s3520_s6 = smov (%p35_p0, %s34_s6), 0  ;;  %s3522_s7 = smov (!%p35_p0, %s37_s7), %s2737_s27 }
  0x17   : > { %3481 = sst [smem:[#allocation19_spill]] %s3520_s6  ;;  %p2851_p3 = por %p52_p2, %p51_p1 }
  0x18   : > { %p57_p4 = scmp.ne.s32.totalorder %s2717_s22, %s2713_s21  ;;  %p39_p5 = scmp.ge.s32.totalorder %s3522_s7, 4 }
  0x19   : > { %p58_p6 = scmp.eq.s32.totalorder %s1971_s29, 0  ;;  %s150_s10 = ssub.s32 %s2733_s26, %s3520_s6 }
  0x1a   : > { %s154_s11 = sadd.s32 1, %s2709_s20  ;;  %s3524_s7 = smov (%p39_p5, %s3522_s7), 0 }
  0x1b   : > { %3483 = sst [smem:[#allocation20_spill]] %s3524_s7  ;;  %p2865_p7 = por %p58_p6, %p57_p4 }
  0x1c   : > { %p164_p8 = scmp.ne.s32.totalorder %s2709_s20, %s2705_s19  ;;  %s41_s13 = ssub.s32 %s2737_s27, %s3524_s7 }
  0x1d   : > { %p165_p9 = scmp.eq.s32.totalorder %s1971_s29, 7  ;;  %p42_p10 = scmp.eq.s32.totalorder %s41_s13, 0 }
  0x1e   : > { %s151_s14 = sor.u32 %s150_s10, %s41_s13  ;;  %p170_p13 = scmp.ne.s32.totalorder %s2705_s19, %s2701_s18 }
  0x1f   : > { %p152_p11 = scmp.eq.s32.totalorder %s151_s14, 0  ;;  %p2873_p12 = por %p165_p9, %p164_p8 }
  0x20   : > { %s2878_s16 = scalar_select %p42_p10, %s2721_s23, %s44_s8  }
  0x21   : > { %s2881_s17 = scalar_select %p152_p11, %s2709_s20, %s154_s11  }
  0x22   : > { %3486 = sst [smem:[#allocation21_spill]] %s2878_s16  ;;  %p171_p0 = scmp.eq.s32.totalorder %s1972_s30, 7 }
  0x23   : > { %3487 = sst [smem:[#allocation22_spill]] %s2881_s17  ;;  %p2888_p2 = por %p165_p9, %p51_p1 }
  0x24   : > { %p2892_p5 = por %p171_p0, %p170_p13  ;;  %p2899_p6 = por %p171_p0, %p57_p4 }
  0x25   : > { %s3488_s7 = scalar_select %p2888_p2, 1, 0 }
  0x26   : > { %s3490_s29 = scalar_select %p2892_p5, 1, 0 }
  0x27   : > { %3489 = sst [smem:[#allocation23_spill]] %s3488_s7  ;;  %p2433_p8 = scmp.lt.s32.totalorder %s2741_s28, 8 }
  0x28   : > { %3491 = sst [smem:[#allocation24_spill]] %s3490_s29  ;;  %s217_s8 = sand.u32 1, %s2721_s23  }
  0x29   : > { %s3492_s10 = scalar_select %p2899_p6, 1, 0 }
  0x2a   : > { %s1975_s11 = sshll.u32 %s217_s8, 8  ;;  %s2064_s13 = sshll.u32 %s2737_s27, 12 }
  0x2b   : > { %3493 = sst [smem:[#allocation25_spill]] %s3492_s10  ;;  %s221_s26 = scalar_lea.vmem [#allocation2], %s1975_s11 }
  0x2c   : > { %s3494_s0 = sld [smem:[#allocation26_spill]]  ;;  %s228_s16 = sshll.u32 %s221_s26, 4  ;;  %s229_s16 = int_to_ptr.vmem [resolvable:$true] %s228_s16 }
  0x2d   : > { %p2911_p1 = pnand %p2433_p8, %p2851_p3  ;;  %p1978_p4 = scmp.ge.s32.totalorder %s2741_s28, 1 }
  0x2e   : > { %s218_s20 = scalar_lea.sflag [#allocation3], %s217_s8  ;;  %s2576_s23 = scalar_lea.vmem %s229_s16, 4096 }
  0x2f   : > { %p2565_p9 = pneg %p2911_p1  ;;  %p2577_p10 = scmp.ne.s32.totalorder %s229_s16, %s2576_s23 }
  0x30   : > { %s2743_s27 = smov [#allocation2]  }
  0x31   : > { %p2579_p11 = pnand %p2577_p10, %p2565_p9  ;;  %s2581_s14 = sshll.u32 %s2743_s27, 4  ;;  %s2582_s14 = int_to_ptr.vmem [resolvable:$false] %s2581_s14 }
  0x32   : > { %s227_s6 = scalar_lea.hbm %s3494_s0, %s2064_s13  ;;  %s2583_s11 = scalar_lea.vmem %s2582_s14, 8192 }
  0x33   : > { %p2580_p13 = pneg %p2579_p11  ;;  %p2584_p0 = scmp.lt.s32.totalorder %s229_s16, %s2582_s14 }
  0x34   : > { %p2585_p6 = scmp.lt.s32.totalorder %s2583_s11, %s2576_s23 }
  0x36   : > { %p2586_p5 = por %p2585_p6, %p2584_p0 }
  0x38   : > { %p2587_p3 = pnand %p2586_p5, %p2580_p13 }
  0x3a   : > { %2590 = shalt.err (!%p2587_p3)
}
  0x3b   : > { %s2744_s26 = smov 64   ;;  %s2745_s9 = smov 4  }
  0x3c   : > { %2425 = dma.hbm_to_vmem [thread:$0]  (!%p2911_p1), %s227_s6, 4096, %s229_s16, %s218_s20, %s2744_s26, %s2744_s26, %s2745_s9  }
  0x3d   : > { %p269_p8 = scmp.lt.s32.totalorder %s2741_s28, 9 }
  0x3f   : > { %p270_p9 = pnand %p1978_p4, %p269_p8 }
  0x40   : > { %s2924_s27 = sand.u32 (!%p270_p9), 1, %s2717_s22  }
  0x41   : > { %273 = sbr.rel (%p270_p9) target bundleno = 678 (0x2a6), region = 36  ;;  %s1979_s23 = sshll.u32 (!%p270_p9), %s2924_s27, 8 }
  0x42   : > { %s276_s8 = scalar_lea.sflag (!%p270_p9), [#allocation3], %s2924_s27  ;;  %s2928_s13 = scalar_lea.vmem (!%p270_p9), [#allocation2], %s1979_s23 }
  0x46   : > { %2688 = dma.done.wait (%p2865_p7), %s276_s8, 4096  }
  0x47   : > { %2690 = vsyncadd (%p2865_p7), %s276_s8, 4294963200  ;;  %s3460_s20 = sand.u32 1, %s2705_s19   ;;  %s1981_s16 = sshll.u32 %s2725_s24, 3 }
  0x48   : > { %s1980_s6 = sshll.u32 %s3460_s20, 7  ;;  %p333_p5 = scmp.lt.s32.totalorder %s2729_s25, 3 }
  0x49   : > { %p335_p6 = scmp.lt.s32.totalorder %s1981_s16, 15  ;;  %s2940_s17 = sshll.u32 %s2725_s24, 5 }
  0x4a   : > { %s2943_s30 = scalar_select %p333_p5, %s2729_s25, 3 }
  0x4b   : > { %s3526_s16 = smov (!%p335_p6, %s1981_s16), 15  ;;  %p346_p7 = scmp.lt.s32.totalorder %s2940_s17, 63 }
  0x4c   : > { %s1983_s12 = sshll.u32 %s2943_s30, 6  ;;  %s1982_s14 = sshll.u32 %s3526_s16, 2 }
  0x4d   : > { %s355_s9 = scalar_lea.vmem %s3451_s3, %s2943_s30  ;;  %s339_s23 = sadd.s32 %s1983_s12, %s1982_s14 }
  0x4e   : > { %s1984_s8 = sshll.u32 %s339_s23, 3  ;;  %s2962_s16 = scalar_lea.vmem [#allocation5], %s1980_s6 }
  0x4f   : > { %s2954_s22 = scalar_lea.vmem %s3449_s1, %s1984_s8  ;;  %s2965_s7 = scalar_lea.vmem [#allocation6], %s2924_s27 }
  0x50   : > { %s347_s10 = scalar_select %p346_p7, %s2940_s17, 63 }
  0x51   : > { %p1988_p1 = scmp.ne.s32.totalorder %s2725_s24, 0 }
  0x52   : > { %s349_s21 = sadd.s32 %s1983_s12, %s347_s10 }
  0x53   : > { %s1987_s29 = sshll.u32 %s349_s21, 3  ;;  %361 = sbr.rel (%p1988_p1) target bundleno = 90 (0x5a), region = 44 }
  0x54   : > { %s2960_s5 = scalar_lea.vmem %s3450_s2, %s1987_s29 }
  0x58   : > { %v2746_v0 = vmov 0.0  }
  0x59   : > { %362 = vst [vmem:[%s2965_s7] sm:$0x1] %v2746_v0 }
  0x5a PF: > { %v2531_v1 = vld [vmem:[%s2928_s13 + $0x78] sm:$0xff]   ;;  %v2747_v3 = vmov 0   ;;  %v2535_v6 = vld [vmem:[%s2928_s13 + $0x70] sm:$0xff]   ;;  %v2539_v10 = vld [vmem:[%s2928_s13 + $0x68] sm:$0xff]   ;;  %p2054_p4 = scmp.eq.s32.totalorder %s2725_s24, 1 }
  0x5b   : > { %v2532_v2 = vld [vmem:[%s2928_s13 + $0xf8] sm:$0xff]   ;;  %2529 = vset.pattern.permute.xlu0 %v2747_v3  ;;  %2530 = vset.pattern.permute.xlu1 %v2747_v3  ;;  %v2536_v7 = vld [vmem:[%s2928_s13 + $0xf0] sm:$0xff]   ;;  %v2540_v11 = vld [vmem:[%s2928_s13 + $0xe8] sm:$0xff]  }
  0x5c   : > { %2192 = vmatprep.subr.bf16.mxu0 %v2531_v1  ;;  %v2533_v4 = vld [vmem:[%s2928_s13 + $0x38] sm:$0xff]   ;;  %2304 = vmatprep.subr.bf16.mxu1 %v2532_v2  ;;  %v2537_v8 = vld [vmem:[%s2928_s13 + $0x30] sm:$0xff]   ;;  %v2541_v12 = vld [vmem:[%s2928_s13 + $0x28] sm:$0xff]  }
  0x5d   : > { %v2534_v5 = vld [vmem:[%s2928_s13 + $0xb8] sm:$0xff]   ;;  %2193 = vmatpush3.bf16.msra.mxu0 %v2533_v4  ;;  %v2538_v9 = vld [vmem:[%s2928_s13 + $0xb0] sm:$0xff]   ;;  %v2542_v13 = vld [vmem:[%s2928_s13 + $0xa8] sm:$0xff]  }
  0x5e   : > { %2305 = vmatpush3.bf16.msra.mxu1 %v2534_v5  ;;  %2194 = vmatprep.subr.bf16.mxu0 %v2535_v6  ;;  %v2543_v14 = vld [vmem:[%s2928_s13 + $0x60] sm:$0xff]   ;;  %v2547_v18 = vld [vmem:[%s2928_s13 + $0x58] sm:$0xff]   ;;  %v2551_v22 = vld [vmem:[%s2928_s13 + $0x50] sm:$0xff]  }
  0x5f   : > { %2306 = vmatprep.subr.bf16.mxu1 %v2536_v7  ;;  %v2544_v15 = vld [vmem:[%s2928_s13 + $0xe0] sm:$0xff]   ;;  %v2548_v19 = vld [vmem:[%s2928_s13 + $0xd8] sm:$0xff]   ;;  %v2552_v23 = vld [vmem:[%s2928_s13 + $0xd0] sm:$0xff]  }
  0x60   : > { %v2545_v16 = vld [vmem:[%s2928_s13 + $0x20] sm:$0xff]   ;;  %v2549_v20 = vld [vmem:[%s2928_s13 + $0x18] sm:$0xff]   ;;  %v2553_v24 = vld [vmem:[%s2928_s13 + $0x10] sm:$0xff]  }
  0x61   : > { %2195 = vmatpush3.bf16.msra.mxu0 %v2537_v8  ;;  %v2546_v17 = vld [vmem:[%s2928_s13 + $0xa0] sm:$0xff]   ;;  %v2550_v21 = vld [vmem:[%s2928_s13 + $0x98] sm:$0xff]   ;;  %v2554_v25 = vld [vmem:[%s2928_s13 + $0x90] sm:$0xff]  }
  0x62   : > { %2307 = vmatpush3.bf16.msra.mxu1 %v2538_v9  ;;  %2196 = vmatprep.subr.bf16.mxu0 %v2539_v10  ;;  %v2555_v26 = vld [vmem:[%s2928_s13 + $0x48] sm:$0xff]   ;;  %v2559_v30 = vld [vmem:[%s2928_s13 + $0x40] sm:$0xff]   ;;  %v366_v35 = vld [vmem:[%s2954_s22 + $0x18] sm:$0xff] }
  0x63   : > { %2308 = vmatprep.subr.bf16.mxu1 %v2540_v11  ;;  %v2556_v27 = vld [vmem:[%s2928_s13 + $0xc8] sm:$0xff]   ;;  %v2560_v31 = vld [vmem:[%s2928_s13 + $0xc0] sm:$0xff]   ;;  %v398_v39 = vunpack.c.l.s8.bf16 %v366_v35  ;;  %v402_v40 = vunpack.c.h.s8.bf16 %v366_v35  ;;  %v365_v41 = vld [vmem:[%s2954_s22 + $0x10] sm:$0xff] }
  0x64   : > { %v2557_v28 = vld [vmem:[%s2928_s13 + $0x8] sm:$0xff]   ;;  %v2561_v32 = vld [vmem:[%s2928_s13] sm:$0xff]   ;;  %v397_v43 = vunpack.c.l.s8.bf16 %v365_v41  ;;  %v370_v45 = vld [vmem:[%s2954_s22 + $0x38] sm:$0xff]  ;;  %v401_v49 = vunpack.c.h.s8.bf16 %v365_v41 }
  0x65   : > { %2197 = vmatpush3.bf16.msra.mxu0 %v2541_v12  ;;  %v2558_v29 = vld [vmem:[%s2928_s13 + $0x88] sm:$0xff]   ;;  %v2562_v33 = vld [vmem:[%s2928_s13 + $0x80] sm:$0xff]   ;;  %908 = vmatprep.mubr.bf16.mxu1 %v398_v39  ;;  %v1039_v47 = vld [vmem:[%s2960_s5 + $0x10] sm:$0xff]  ;;  %v406_v52 = vunpack.c.l.s8.bf16 %v370_v45  ;;  %v410_v62 = vunpack.c.h.s8.bf16 %v370_v45 }
  0x66   : > { %2309 = vmatpush3.bf16.msra.mxu1 %v2542_v13  ;;  %2198 = vmatprep.subr.bf16.mxu0 %v2543_v14  ;;  %v364_v34 = vld [vmem:[%s2954_s22 + $0x8] sm:$0xff]  ;;  %v363_v36 = vld [vmem:[%s2954_s22] sm:$0xff]  ;;  %v1040_v53 = vld [vmem:[%s2960_s5 + $0x18] sm:$0xff] }
  0x67   : > { %2310 = vmatprep.subr.bf16.mxu1 %v2544_v15  ;;  %v396_v37 = vunpack.c.l.s8.bf16 %v364_v34  ;;  %v400_v38 = vunpack.c.h.s8.bf16 %v364_v34  ;;  %v395_v42 = vunpack.c.l.s8.bf16 %v363_v36  ;;  %v368_v44 = vld [vmem:[%s2954_s22 + $0x28] sm:$0xff]  ;;  %v1037_v46 = vld [vmem:[%s2960_s5] sm:$0xff]  ;;  %v399_v48 = vunpack.c.h.s8.bf16 %v363_v36  ;;  %1081 = vperm.xlu1 %2530, %v1039_v47   ;;  %v369_v56 = vld [vmem:[%s2954_s22 + $0x30] sm:$0xff] }
  0x68   : > { %1071 = vperm.xlu0 %2529, %v1037_v46   ;;  %v1038_v50 = vld [vmem:[%s2960_s5 + $0x8] sm:$0xff]  ;;  %v404_v51 = vunpack.c.l.s8.bf16 %v368_v44  ;;  %v1041_v54 = vld [vmem:[%s2960_s5 + $0x20] sm:$0xff]  ;;  %v405_v59 = vunpack.c.l.s8.bf16 %v369_v56  ;;  %v1043_v60 = vld [vmem:[%s2960_s5 + $0x30] sm:$0xff]  ;;  %v408_v61 = vunpack.c.h.s8.bf16 %v368_v44  ;;  %v409_v5 = vunpack.c.h.s8.bf16 %v369_v56 }
  0x69   : > { %2199 = vmatpush3.bf16.msra.mxu0 %v2545_v16  ;;  %747 = vmatprep.mubr.bf16.mxu0 %v396_v37  ;;  %v367_v55 = vld [vmem:[%s2954_s22 + $0x20] sm:$0xff]  ;;  %v1042_v57 = vld [vmem:[%s2960_s5 + $0x28] sm:$0xff]  ;;  %v1044_v63 = vld [vmem:[%s2960_s5 + $0x38] sm:$0xff] }
  0x6a   : > { %2311 = vmatpush3.bf16.msra.mxu1 %v2546_v17  ;;  %2200 = vmatprep.subr.bf16.mxu0 %v2547_v18  ;;  %v403_v58 = vunpack.c.l.s8.bf16 %v367_v55  ;;  %v1045_v0 = vld [vmem:[%s2960_s5 + $0x40] sm:$0xff]  ;;  %v372_v1 = vld [vmem:[%s2954_s22 + $0x48] sm:$0xff]  ;;  %v374_v2 = vld [vmem:[%s2954_s22 + $0x58] sm:$0xff]  ;;  %v407_v4 = vunpack.c.h.s8.bf16 %v367_v55 }
  0x6b   : > { %2312 = vmatprep.subr.bf16.mxu1 %v2548_v19  ;;  %1086 = vperm.xlu1 %2530, %v1040_v53   ;;  %v1046_v3 = vld [vmem:[%s2960_s5 + $0x48] sm:$0xff]  ;;  %v1047_v6 = vld [vmem:[%s2960_s5 + $0x50] sm:$0xff]  ;;  %v412_v7 = vunpack.c.l.s8.bf16 %v372_v1  ;;  %v414_v8 = vunpack.c.l.s8.bf16 %v374_v2  ;;  %v1048_v9 = vld [vmem:[%s2960_s5 + $0x58] sm:$0xff]  ;;  %v416_v17 = vunpack.c.h.s8.bf16 %v372_v1  ;;  %v418_v18 = vunpack.c.h.s8.bf16 %v374_v2 }
  0x6c   : > { %1076 = vperm.xlu0 %2529, %v1038_v50   ;;  %v1049_v10 = vld [vmem:[%s2960_s5 + $0x60] sm:$0xff]  ;;  %v373_v12 = vld [vmem:[%s2954_s22 + $0x50] sm:$0xff]  ;;  %v1050_v13 = vld [vmem:[%s2960_s5 + $0x68] sm:$0xff] }
  0x6d   : > { %2201 = vmatpush3.bf16.msra.mxu0 %v2549_v20  ;;  %v371_v11 = vld [vmem:[%s2954_s22 + $0x40] sm:$0xff]  ;;  %v413_v15 = vunpack.c.l.s8.bf16 %v373_v12  ;;  %v1051_v16 = vld [vmem:[%s2960_s5 + $0x70] sm:$0xff]  ;;  %v1052_v19 = vld [vmem:[%s2960_s5 + $0x78] sm:$0xff] }
  0x6e   : > { %2313 = vmatpush3.bf16.msra.mxu1 %v2550_v21  ;;  %2202 = vmatprep.subr.bf16.mxu0 %v2551_v22  ;;  %v411_v14 = vunpack.c.l.s8.bf16 %v371_v11  ;;  %v1053_v20 = vld [vmem:[%s2960_s5 + $0x80] sm:$0xff]  ;;  %v376_v21 = vld [vmem:[%s2954_s22 + $0x68] sm:$0xff]  ;;  %v378_v22 = vld [vmem:[%s2954_s22 + $0x78] sm:$0xff] }
  0x6f   : > { %2314 = vmatprep.subr.bf16.mxu1 %v2552_v23  ;;  %1096 = vperm.xlu1 %2530, %v1042_v57   ;;  %v1054_v23 = vld [vmem:[%s2960_s5 + $0x88] sm:$0xff]  ;;  %v1059_v36 = vld [vmem:[%s2960_s5 + $0xb0] sm:$0xff]  ;;  %v424_v37 = vunpack.c.h.s8.bf16 %v376_v21  ;;  %v1060_v39 = vld [vmem:[%s2960_s5 + $0xb8] sm:$0xff] }
  0x70   : > { %1091 = vperm.xlu0 %2529, %v1041_v54   ;;  %v380_v41 = vld [vmem:[%s2954_s22 + $0x88] sm:$0xff]  ;;  %v1063_v46 = vld [vmem:[%s2960_s5 + $0xd0] sm:$0xff]  ;;  %v1065_v50 = vld [vmem:[%s2960_s5 + $0xe0] sm:$0xff] }
  0x71   : > { %2203 = vmatpush3.bf16.msra.mxu0 %v2553_v24  ;;  %v415_v24 = vunpack.c.h.s8.bf16 %v371_v11  ;;  %v428_v47 = vunpack.c.l.s8.bf16 %v380_v41  ;;  %v1066_v53 = vld [vmem:[%s2960_s5 + $0xe8] sm:$0xff]  ;;  %v1067_v56 = vld [vmem:[%s2960_s5 + $0xf0] sm:$0xff]  ;;  %v432_v57 = vunpack.c.h.s8.bf16 %v380_v41  ;;  %v383_v2 = vld [vmem:[%s2954_s22 + $0xa0] sm:$0xff] }
  0x72   : > { %2315 = vmatpush3.bf16.msra.mxu1 %v2554_v25  ;;  %2204 = vmatprep.subr.bf16.mxu0 %v2555_v26  ;;  %v417_v25 = vunpack.c.h.s8.bf16 %v373_v12  ;;  %v1055_v26 = vld [vmem:[%s2960_s5 + $0x90] sm:$0xff] }
  0x73   : > { %2316 = vmatprep.subr.bf16.mxu1 %v2556_v27  ;;  %1106 = vperm.xlu1 %2530, %v1044_v63   ;;  %v420_v27 = vunpack.c.l.s8.bf16 %v376_v21  ;;  %v394_v21 = vld [vmem:[%s2954_s22 + $0xf8] sm:$0xff] }
  0x74   : > { %1101 = vperm.xlu0 %2529, %v1043_v60   ;;  %v384_v60 = vld [vmem:[%s2954_s22 + $0xa8] sm:$0xff] }
  0x75   : > { %2205 = vmatpush3.bf16.msra.mxu0 %v2557_v28  ;;  %v422_v28 = vunpack.c.l.s8.bf16 %v378_v22 }
  0x76   : > { %2317 = vmatpush3.bf16.msra.mxu1 %v2558_v29  ;;  %2206 = vmatprep.subr.bf16.mxu0 %v2559_v30  ;;  %v1056_v29 = vld [vmem:[%s2960_s5 + $0x98] sm:$0xff]  ;;  %v1057_v30 = vld [vmem:[%s2960_s5 + $0xa0] sm:$0xff] }
  0x77   : > { %2318 = vmatprep.subr.bf16.mxu1 %v2560_v31  ;;  %1116 = vperm.xlu1 %2530, %v1046_v3   ;;  %v375_v31 = vld [vmem:[%s2954_s22 + $0x60] sm:$0xff]  ;;  %v385_v3 = vld [vmem:[%s2954_s22 + $0xb0] sm:$0xff] }
  0x78   : > { %1111 = vperm.xlu0 %2529, %v1045_v0   ;;  %v419_v34 = vunpack.c.l.s8.bf16 %v375_v31  ;;  %v423_v44 = vunpack.c.h.s8.bf16 %v375_v31  ;;  %v436_v0 = vunpack.c.l.s8.bf16 %v384_v60  ;;  %v441_v11 = vunpack.c.h.s8.bf16 %v385_v3 }
  0x79   : > { %2207 = vmatpush3.bf16.msra.mxu0 %v2561_v32  ;;  %v377_v32 = vld [vmem:[%s2954_s22 + $0x70] sm:$0xff]  ;;  %v458_v31 = vunpack.c.h.s8.bf16 %v394_v21 }
  0x7a   : > { %2319 = vmatpush3.bf16.msra.mxu1 %v2562_v33  ;;  %v1058_v33 = vld [vmem:[%s2960_s5 + $0xa8] sm:$0xff]  ;;  %v421_v35 = vunpack.c.l.s8.bf16 %v377_v32  ;;  %v425_v45 = vunpack.c.h.s8.bf16 %v377_v32 }
  0x7b   : > { %1126 = vperm.xlu1 %2530, %v1048_v9   ;;  %v390_v9 = vld [vmem:[%s2954_s22 + $0xd8] sm:$0xff] }
  0x7c   : > { %748 = vmatmul.mubr.bf16.vlgmr.msra.gmra.mxu0 %v395_v42  ;;  %1121 = vperm.xlu0 %2529, %v1047_v6   ;;  %v382_v42 = vld [vmem:[%s2954_s22 + $0x98] sm:$0xff]  ;;  %v440_v6 = vunpack.c.h.s8.bf16 %v384_v60 }
  0x7d   : > { %909 = vmatmul.mubr.bf16.vlgmr.msra.gmra.mxu1 %v397_v43  ;;  %755 = vmatprep.mubr.bf16.mxu0 %v400_v38  ;;  %v426_v38 = vunpack.c.h.s8.bf16 %v378_v22  ;;  %v1062_v43 = vld [vmem:[%s2960_s5 + $0xc8] sm:$0xff] }
  0x7e   : > { %916 = vmatprep.mubr.bf16.mxu1 %v402_v40  ;;  %v1061_v40 = vld [vmem:[%s2960_s5 + $0xc0] sm:$0xff] }
  0x7f   : > { %1136 = vperm.xlu1 %2530, %v1050_v13   ;;  %v446_v13 = vunpack.c.l.s8.bf16 %v390_v9 }
  0x80   : > { %1131 = vperm.xlu0 %2529, %v1049_v10   ;;  %v439_v10 = vunpack.c.h.s8.bf16 %v383_v2 }
  0x83   : > { %1146 = vperm.xlu1 %2530, %v1052_v19   ;;  %v450_v19 = vunpack.c.h.s8.bf16 %v390_v9 }
  0x84   : > { %756 = vmatmul.mubr.bf16.gmra.mxu0 %v399_v48  ;;  %1141 = vperm.xlu0 %2529, %v1051_v16   ;;  %v430_v48 = vunpack.c.l.s8.bf16 %v382_v42 }
  0x85   : > { %917 = vmatmul.mubr.bf16.gmra.mxu1 %v401_v49  ;;  %763 = vmatprep.mubr.bf16.mxu0 %v404_v51  ;;  %v1064_v49 = vld [vmem:[%s2960_s5 + $0xd8] sm:$0xff]  ;;  %v379_v51 = vld [vmem:[%s2954_s22 + $0x80] sm:$0xff] }
  0x86   : > { %924 = vmatprep.mubr.bf16.mxu1 %v406_v52  ;;  %v381_v52 = vld [vmem:[%s2954_s22 + $0x90] sm:$0xff]  ;;  %v427_v54 = vunpack.c.l.s8.bf16 %v379_v51 }
  0x87   : > { %1156 = vperm.xlu1 %2530, %v1054_v23   ;;  %v429_v55 = vunpack.c.l.s8.bf16 %v381_v52  ;;  %v433_v63 = vunpack.c.h.s8.bf16 %v381_v52 }
  0x88   : > { %1151 = vperm.xlu0 %2529, %v1053_v20   ;;  %v392_v20 = vld [vmem:[%s2954_s22 + $0xe8] sm:$0xff] }
  0x8b   : > { %1166 = vperm.xlu1 %2530, %v1056_v29  }
  0x8c   : > { %764 = vmatmul.mubr.bf16.gmra.mxu0 %v403_v58  ;;  %1161 = vperm.xlu0 %2529, %v1055_v26   ;;  %v434_v58 = vunpack.c.h.s8.bf16 %v382_v42  ;;  %v391_v26 = vld [vmem:[%s2954_s22 + $0xe0] sm:$0xff] }
  0x8d   : > { %925 = vmatmul.mubr.bf16.gmra.mxu1 %v405_v59  ;;  %771 = vmatprep.mubr.bf16.mxu0 %v408_v61  ;;  %v1068_v59 = vld [vmem:[%s2960_s5 + $0xf8] sm:$0xff]  ;;  %v455_v32 = vunpack.c.h.s8.bf16 %v391_v26 }
  0x8e   : > { %932 = vmatprep.mubr.bf16.mxu1 %v410_v62  ;;  %v386_v61 = vld [vmem:[%s2954_s22 + $0xb8] sm:$0xff]  ;;  %v431_v62 = vunpack.c.h.s8.bf16 %v379_v51 }
  0x8f   : > { %1176 = vperm.xlu1 %2530, %v1058_v33   ;;  %v438_v1 = vunpack.c.l.s8.bf16 %v386_v61 }
  0x90   : > { %1171 = vperm.xlu0 %2529, %v1057_v30   ;;  %v456_v30 = vunpack.c.h.s8.bf16 %v392_v20 }
  0x93   : > { %1186 = vperm.xlu1 %2530, %v1060_v39  }
  0x94   : > { %772 = vmatmul.mubr.bf16.gmra.mxu0 %v407_v4  ;;  %1181 = vperm.xlu0 %2529, %v1059_v36   ;;  %v435_v4 = vunpack.c.l.s8.bf16 %v383_v2 }
  0x95   : > { %933 = vmatmul.mubr.bf16.gmra.mxu1 %v409_v5  ;;  %779 = vmatprep.mubr.bf16.mxu0 %v412_v7  ;;  %v437_v5 = vunpack.c.l.s8.bf16 %v385_v3  ;;  %v442_v7 = vunpack.c.h.s8.bf16 %v386_v61 }
  0x96   : > { %940 = vmatprep.mubr.bf16.mxu1 %v414_v8  ;;  %v388_v8 = vld [vmem:[%s2954_s22 + $0xc8] sm:$0xff] }
  0x97   : > { %1196 = vperm.xlu1 %2530, %v1062_v43   ;;  %v444_v12 = vunpack.c.l.s8.bf16 %v388_v8 }
  0x98   : > { %1191 = vperm.xlu0 %2529, %v1061_v40  }
  0x9b   : > { %1206 = vperm.xlu1 %2530, %v1064_v49  }
  0x9c   : > { %780 = vmatmul.mubr.bf16.gmra.mxu0 %v411_v14  ;;  %1201 = vperm.xlu0 %2529, %v1063_v46   ;;  %v387_v14 = vld [vmem:[%s2954_s22 + $0xc0] sm:$0xff] }
  0x9d   : > { %941 = vmatmul.mubr.bf16.gmra.mxu1 %v413_v15  ;;  %787 = vmatprep.mubr.bf16.mxu0 %v416_v17  ;;  %v389_v15 = vld [vmem:[%s2954_s22 + $0xd0] sm:$0xff]  ;;  %v443_v16 = vunpack.c.l.s8.bf16 %v387_v14  ;;  %v447_v22 = vunpack.c.h.s8.bf16 %v387_v14  ;;  %v3070_v46 = vld [vmem:[%s355_s9] ss:$0 sm:$0xff] }
  0x9e   : > { %948 = vmatprep.mubr.bf16.mxu1 %v418_v18  ;;  %v445_v17 = vunpack.c.l.s8.bf16 %v389_v15  ;;  %v448_v18 = vunpack.c.h.s8.bf16 %v388_v8  ;;  %v449_v23 = vunpack.c.h.s8.bf16 %v389_v15 }
  0x9f   : > { %1216 = vperm.xlu1 %2530, %v1066_v53  }
  0xa0   : > { %1211 = vperm.xlu0 %2529, %v1065_v50  }
  0xa3   : > { %1226 = vperm.xlu1 %2530, %v1068_v59  }
  0xa4   : > { %788 = vmatmul.mubr.bf16.gmra.mxu0 %v415_v24  ;;  %1221 = vperm.xlu0 %2529, %v1067_v56   ;;  %v452_v24 = vunpack.c.l.s8.bf16 %v392_v20 }
  0xa5   : > { %949 = vmatmul.mubr.bf16.gmra.mxu1 %v417_v25  ;;  %795 = vmatprep.mubr.bf16.mxu0 %v420_v27  ;;  %v454_v25 = vunpack.c.l.s8.bf16 %v394_v21  ;;  %v393_v27 = vld [vmem:[%s2954_s22 + $0xf0] sm:$0xff] }
  0xa6   : > { %956 = vmatprep.mubr.bf16.mxu1 %v422_v28  ;;  %v451_v28 = vunpack.c.l.s8.bf16 %v391_v26  ;;  %v453_v29 = vunpack.c.l.s8.bf16 %v393_v27  ;;  %v457_v33 = vunpack.c.h.s8.bf16 %v393_v27 }
  0xac   : > { %796 = vmatmul.mubr.bf16.gmra.mxu0 %v419_v34 }
  0xad   : > { %957 = vmatmul.mubr.bf16.gmra.mxu1 %v421_v35  ;;  %803 = vmatprep.mubr.bf16.mxu0 %v424_v37 }
  0xae   : > { %964 = vmatprep.mubr.bf16.mxu1 %v426_v38 }
  0xb4   : > { %804 = vmatmul.mubr.bf16.gmra.mxu0 %v423_v44 }
  0xb5   : > { %965 = vmatmul.mubr.bf16.gmra.mxu1 %v425_v45  ;;  %811 = vmatprep.mubr.bf16.mxu0 %v428_v47 }
  0xb6   : > { %972 = vmatprep.mubr.bf16.mxu1 %v430_v48 }
  0xbc   : > { %812 = vmatmul.mubr.bf16.gmra.mxu0 %v427_v54 }
  0xbd   : > { %973 = vmatmul.mubr.bf16.gmra.mxu1 %v429_v55  ;;  %819 = vmatprep.mubr.bf16.mxu0 %v432_v57 }
  0xbe   : > { %980 = vmatprep.mubr.bf16.mxu1 %v434_v58 }
  0xc4   : > { %820 = vmatmul.mubr.bf16.gmra.mxu0 %v431_v62 }
  0xc5   : > { %981 = vmatmul.mubr.bf16.gmra.mxu1 %v433_v63  ;;  %827 = vmatprep.mubr.bf16.mxu0 %v436_v0 }
  0xc6   : > { %988 = vmatprep.mubr.bf16.mxu1 %v438_v1 }
  0xcc   : > { %828 = vmatmul.mubr.bf16.gmra.mxu0 %v435_v4 }
  0xcd   : > { %989 = vmatmul.mubr.bf16.gmra.mxu1 %v437_v5  ;;  %835 = vmatprep.mubr.bf16.mxu0 %v440_v6 }
  0xce   : > { %996 = vmatprep.mubr.bf16.mxu1 %v442_v7 }
  0xd4   : > { %836 = vmatmul.mubr.bf16.gmra.mxu0 %v439_v10 }
  0xd5   : > { %997 = vmatmul.mubr.bf16.gmra.mxu1 %v441_v11  ;;  %843 = vmatprep.mubr.bf16.mxu0 %v444_v12 }
  0xd6   : > { %1004 = vmatprep.mubr.bf16.mxu1 %v446_v13 }
  0xdc   : > { %844 = vmatmul.mubr.bf16.gmra.mxu0 %v443_v16 }
  0xdd   : > { %1005 = vmatmul.mubr.bf16.gmra.mxu1 %v445_v17  ;;  %851 = vmatprep.mubr.bf16.mxu0 %v448_v18 }
  0xde   : > { %1012 = vmatprep.mubr.bf16.mxu1 %v450_v19 }
  0xe2   : > { %v1082_v57 = vpop.permute.xlu1 %1081 }
  0xe3   : > { %v1072_v36 = vpop.permute.xlu0 %1071 }
  0xe4   : > { %852 = vmatmul.mubr.bf16.gmra.mxu0 %v447_v22 }
  0xe5   : > { %1013 = vmatmul.mubr.bf16.gmra.mxu1 %v449_v23  ;;  %859 = vmatprep.mubr.bf16.mxu0 %v452_v24 }
  0xe6   : > { %1020 = vmatprep.mubr.bf16.mxu1 %v454_v25  ;;  %v1087_v11 = vpop.permute.xlu1 %1086 }
  0xe7   : > { %v1077_v50 = vpop.permute.xlu0 %1076 }
  0xeb   : > { %v1092_v22 = vpop.permute.xlu0 %1091 }
  0xec   : > { %860 = vmatmul.mubr.bf16.gmra.mxu0 %v451_v28 }
  0xed   : > { %1021 = vmatmul.mubr.bf16.gmra.mxu1 %v453_v29  ;;  %867 = vmatprep.mubr.bf16.mxu0 %v456_v30 }
  0xee   : > { %1028 = vmatprep.mubr.bf16.mxu1 %v458_v31 }
  0xf4   : > { %868 = vmatmul.mubr.bf16.gmra.mxu0 %v455_v32 }
  0xf5   : > { %1029 = vmatmul.mubr.bf16.gmra.mxu1 %v457_v33 }
 0x13c   : > { %v2208_v34 = vpop.f32.mrf.mxu0 }
 0x13d   : > { %v2320_v35 = vpop.f32.mrf.mxu1 }
 0x13e   : > { %v2209_v37 = vpop.f32.mrf.mxu0 }
 0x13f   : > { %v2321_v38 = vpop.f32.mrf.mxu1  ;;  %v2210_v39 = vadd.f32 %v2209_v37, %v2208_v34  ;;  %v1097_v34 = vpop.permute.xlu1 %1096 }
 0x140   : > { %v2322_v40 = vadd.f32 %v2321_v38, %v2320_v35  ;;  %v2211_v41 = vpop.f32.mrf.mxu0 }
 0x141   : > { %v2323_v42 = vpop.f32.mrf.mxu1 }
 0x142   : > { %v911_v43 = vadd.f32 %v2322_v40, %v2210_v39  ;;  %v2212_v44 = vpop.f32.mrf.mxu0 }
 0x143   : > { %v2324_v45 = vpop.f32.mrf.mxu1  ;;  %v2213_v48 = vadd.f32 %v2212_v44, %v2211_v41  ;;  %v1102_v44 = vpop.permute.xlu0 %1101 }
 0x144   : > { %v1229_v47 = vmul.f32 %v1072_v36, %v911_v43  ;;  %v2325_v49 = vadd.f32 %v2324_v45, %v2323_v42  ;;  %v2214_v51 = vpop.f32.mrf.mxu0 }
 0x145   : > { %v2326_v52 = vpop.f32.mrf.mxu1 }
 0x146   : > { %v914_v53 = vadd.f32 %v2325_v49, %v2213_v48  ;;  %v1268_v54 = vadd.f32 %v3070_v46, %v1229_v47  ;;  %v2215_v55 = vpop.f32.mrf.mxu0 }
 0x147   : > { %v2327_v56 = vpop.f32.mrf.mxu1  ;;  %v2216_v59 = vadd.f32 %v2215_v55, %v2214_v51 }
 0x148   : > { %v1230_v58 = vmul.f32 %v1077_v50, %v914_v53  ;;  %v2328_v60 = vadd.f32 %v2327_v56, %v2326_v52  ;;  %v2217_v61 = vpop.f32.mrf.mxu0  ;;  %v3074_v1 = vmax.f32 %v1268_v54, 0.0 }
 0x149   : > { %v2329_v62 = vpop.f32.mrf.mxu1 }
 0x14a   : > { %v1269_v63 = vadd.f32 %v3070_v46, %v1230_v58  ;;  %v919_v0 = vadd.f32 %v2328_v60, %v2216_v59  ;;  %v2218_v2 = vpop.f32.mrf.mxu0 }
 0x14b   : > { %v2330_v3 = vpop.f32.mrf.mxu1  ;;  %v2219_v6 = vadd.f32 %v2218_v2, %v2217_v61 }
 0x14c   : > { %v3076_v4 = vmax.f32 %v1269_v63, 0.0  ;;  %v1231_v5 = vmul.f32 %v1082_v57, %v919_v0  ;;  %v2331_v7 = vadd.f32 %v2330_v3, %v2329_v62  ;;  %v2220_v8 = vpop.f32.mrf.mxu0  ;;  %v1107_v57 = vpop.permute.xlu1 %1106 }
 0x14d   : > { %v2332_v9 = vpop.f32.mrf.mxu1 }
 0x14e   : > { %v2100_v10 = vpack.c.bf16 %v3076_v4, %v3074_v1  ;;  %v922_v12 = vadd.f32 %v2331_v7, %v2219_v6  ;;  %v1270_v13 = vadd.f32 %v3070_v46, %v1231_v5  ;;  %v2221_v14 = vpop.f32.mrf.mxu0  ;;  %v1112_v6 = vpop.permute.xlu0 %1111 }
 0x14f   : > { %v2333_v15 = vpop.f32.mrf.mxu1  ;;  %v2222_v17 = vadd.f32 %v2221_v14, %v2220_v8 }
 0x150   : > { %2101 = vst [vmem:[%s2962_s16] sm:$0xff] %v2100_v10   ;;  %v1232_v16 = vmul.f32 %v1087_v11, %v922_v12  ;;  %v2334_v18 = vadd.f32 %v2333_v15, %v2332_v9  ;;  %v2223_v19 = vpop.f32.mrf.mxu0  ;;  %v3083_v24 = vmax.f32 %v1270_v13, 0.0 }
 0x151   : > { %v2335_v20 = vpop.f32.mrf.mxu1 }
 0x152   : > { %v1271_v21 = vadd.f32 %v3070_v46, %v1232_v16  ;;  %v927_v23 = vadd.f32 %v2334_v18, %v2222_v17  ;;  %v2224_v25 = vpop.f32.mrf.mxu0  ;;  %v1117_v18 = vpop.permute.xlu1 %1116 }
 0x153   : > { %v2336_v26 = vpop.f32.mrf.mxu1  ;;  %v2225_v29 = vadd.f32 %v2224_v25, %v2223_v19 }
 0x154   : > { %v3085_v27 = vmax.f32 %v1271_v21, 0.0  ;;  %v1233_v28 = vmul.f32 %v1092_v22, %v927_v23  ;;  %v2337_v30 = vadd.f32 %v2336_v26, %v2335_v20  ;;  %v2226_v31 = vpop.f32.mrf.mxu0 }
 0x155   : > { %v2338_v32 = vpop.f32.mrf.mxu1 }
 0x156   : > { %v2105_v33 = vpack.c.bf16 %v3085_v27, %v3083_v24  ;;  %v930_v35 = vadd.f32 %v2337_v30, %v2225_v29  ;;  %v1272_v36 = vadd.f32 %v3070_v46, %v1233_v28  ;;  %v2227_v37 = vpop.f32.mrf.mxu0 }
 0x157   : > { %v2339_v38 = vpop.f32.mrf.mxu1  ;;  %v2228_v40 = vadd.f32 %v2227_v37, %v2226_v31  ;;  %v1122_v31 = vpop.permute.xlu0 %1121 }
 0x158   : > { %2177 = vst [vmem:[%s2962_s16 + $0x8] sm:$0xff] %v2105_v33   ;;  %v1234_v39 = vmul.f32 %v1097_v34, %v930_v35  ;;  %v2340_v41 = vadd.f32 %v2339_v38, %v2338_v32  ;;  %v2229_v42 = vpop.f32.mrf.mxu0  ;;  %v3092_v48 = vmax.f32 %v1272_v36, 0.0 }
 0x159   : > { %v2341_v43 = vpop.f32.mrf.mxu1 }
 0x15a   : > { %v1273_v45 = vadd.f32 %v3070_v46, %v1234_v39  ;;  %v935_v47 = vadd.f32 %v2340_v41, %v2228_v40  ;;  %v2230_v49 = vpop.f32.mrf.mxu0 }
 0x15b   : > { %v2342_v50 = vpop.f32.mrf.mxu1  ;;  %v2231_v53 = vadd.f32 %v2230_v49, %v2229_v42 }
 0x15c   : > { %v3094_v51 = vmax.f32 %v1273_v45, 0.0  ;;  %v1235_v52 = vmul.f32 %v1102_v44, %v935_v47  ;;  %v2343_v54 = vadd.f32 %v2342_v50, %v2341_v43  ;;  %v2232_v55 = vpop.f32.mrf.mxu0  ;;  %v1127_v43 = vpop.permute.xlu1 %1126 }
 0x15d   : > { %v2344_v56 = vpop.f32.mrf.mxu1 }
 0x15e   : > { %v2110_v58 = vpack.c.bf16 %v3094_v51, %v3092_v48  ;;  %v938_v59 = vadd.f32 %v2343_v54, %v2231_v53  ;;  %v1274_v60 = vadd.f32 %v3070_v46, %v1235_v52  ;;  %v2233_v61 = vpop.f32.mrf.mxu0 }
 0x15f   : > { %v2345_v62 = vpop.f32.mrf.mxu1  ;;  %v2234_v0 = vadd.f32 %v2233_v61, %v2232_v55 }
 0x160   : > { %2178 = vst [vmem:[%s2962_s16 + $0x10] sm:$0xff] %v2110_v58   ;;  %v1236_v63 = vmul.f32 %v1107_v57, %v938_v59  ;;  %v2346_v2 = vadd.f32 %v2345_v62, %v2344_v56  ;;  %v2235_v3 = vpop.f32.mrf.mxu0  ;;  %v3101_v9 = vmax.f32 %v1274_v60, 0.0  ;;  %v1132_v57 = vpop.permute.xlu0 %1131 }
 0x161   : > { %v2347_v5 = vpop.f32.mrf.mxu1 }
 0x162   : > { %v1275_v7 = vadd.f32 %v3070_v46, %v1236_v63  ;;  %v943_v8 = vadd.f32 %v2346_v2, %v2234_v0  ;;  %v2236_v10 = vpop.f32.mrf.mxu0 }
 0x163   : > { %v2348_v11 = vpop.f32.mrf.mxu1  ;;  %v2237_v14 = vadd.f32 %v2236_v10, %v2235_v3 }
 0x164   : > { %v3103_v12 = vmax.f32 %v1275_v7, 0.0  ;;  %v1237_v13 = vmul.f32 %v1112_v6, %v943_v8  ;;  %v2349_v15 = vadd.f32 %v2348_v11, %v2347_v5  ;;  %v2238_v16 = vpop.f32.mrf.mxu0  ;;  %v1137_v7 = vpop.permute.xlu1 %1136 }
 0x165   : > { %v2350_v17 = vpop.f32.mrf.mxu1 }
 0x166   : > { %v2115_v19 = vpack.c.bf16 %v3103_v12, %v3101_v9  ;;  %v946_v20 = vadd.f32 %v2349_v15, %v2237_v14  ;;  %v1276_v21 = vadd.f32 %v3070_v46, %v1237_v13  ;;  %v2239_v22 = vpop.f32.mrf.mxu0 }
 0x167   : > { %v2351_v23 = vpop.f32.mrf.mxu1  ;;  %v2240_v26 = vadd.f32 %v2239_v22, %v2238_v16 }
 0x168   : > { %2179 = vst [vmem:[%s2962_s16 + $0x18] sm:$0xff] %v2115_v19   ;;  %v1238_v25 = vmul.f32 %v1117_v18, %v946_v20  ;;  %v2352_v28 = vadd.f32 %v2351_v23, %v2350_v17  ;;  %v2241_v29 = vpop.f32.mrf.mxu0  ;;  %v3110_v34 = vmax.f32 %v1276_v21, 0.0  ;;  %v1142_v20 = vpop.permute.xlu0 %1141 }
 0x169   : > { %v2353_v30 = vpop.f32.mrf.mxu1 }
 0x16a   : > { %v1277_v32 = vadd.f32 %v3070_v46, %v1238_v25  ;;  %v951_v33 = vadd.f32 %v2352_v28, %v2240_v26  ;;  %v2242_v35 = vpop.f32.mrf.mxu0 }
 0x16b   : > { %v2354_v36 = vpop.f32.mrf.mxu1  ;;  %v2243_v39 = vadd.f32 %v2242_v35, %v2241_v29  ;;  %v1147_v35 = vpop.permute.xlu1 %1146 }
 0x16c   : > { %v3112_v37 = vmax.f32 %v1277_v32, 0.0  ;;  %v1239_v38 = vmul.f32 %v1122_v31, %v951_v33  ;;  %v2355_v40 = vadd.f32 %v2354_v36, %v2353_v30  ;;  %v2244_v41 = vpop.f32.mrf.mxu0 }
 0x16d   : > { %v2356_v42 = vpop.f32.mrf.mxu1 }
 0x16e   : > { %v2120_v44 = vpack.c.bf16 %v3112_v37, %v3110_v34  ;;  %v954_v45 = vadd.f32 %v2355_v40, %v2243_v39  ;;  %v1278_v47 = vadd.f32 %v3070_v46, %v1239_v38  ;;  %v2245_v49 = vpop.f32.mrf.mxu0 }
 0x16f   : > { %v2357_v50 = vpop.f32.mrf.mxu1  ;;  %v2246_v53 = vadd.f32 %v2245_v49, %v2244_v41  ;;  %v1152_v49 = vpop.permute.xlu0 %1151 }
 0x170   : > { %2180 = vst [vmem:[%s2962_s16 + $0x20] sm:$0xff] %v2120_v44   ;;  %v1240_v52 = vmul.f32 %v1127_v43, %v954_v45  ;;  %v2358_v54 = vadd.f32 %v2357_v50, %v2356_v42  ;;  %v2247_v55 = vpop.f32.mrf.mxu0  ;;  %v3119_v60 = vmax.f32 %v1278_v47, 0.0 }
 0x171   : > { %v2359_v56 = vpop.f32.mrf.mxu1 }
 0x172   : > { %v1279_v58 = vadd.f32 %v3070_v46, %v1240_v52  ;;  %v959_v59 = vadd.f32 %v2358_v54, %v2246_v53  ;;  %v2248_v61 = vpop.f32.mrf.mxu0 }
 0x173   : > { %v2360_v62 = vpop.f32.mrf.mxu1  ;;  %v2249_v2 = vadd.f32 %v2248_v61, %v2247_v55 }
 0x174   : > { %v3121_v63 = vmax.f32 %v1279_v58, 0.0  ;;  %v1241_v0 = vmul.f32 %v1132_v57, %v959_v59  ;;  %v2361_v3 = vadd.f32 %v2360_v62, %v2359_v56  ;;  %v2250_v5 = vpop.f32.mrf.mxu0 }
 0x175   : > { %v2362_v6 = vpop.f32.mrf.mxu1 }
 0x176   : > { %v2125_v8 = vpack.c.bf16 %v3121_v63, %v3119_v60  ;;  %v962_v10 = vadd.f32 %v2361_v3, %v2249_v2  ;;  %v1280_v11 = vadd.f32 %v3070_v46, %v1241_v0  ;;  %v2251_v13 = vpop.f32.mrf.mxu0  ;;  %v1157_v0 = vpop.permute.xlu1 %1156 }
 0x177   : > { %v2363_v14 = vpop.f32.mrf.mxu1  ;;  %v2252_v16 = vadd.f32 %v2251_v13, %v2250_v5 }
 0x178   : > { %2181 = vst [vmem:[%s2962_s16 + $0x28] sm:$0xff] %v2125_v8   ;;  %v1242_v15 = vmul.f32 %v1137_v7, %v962_v10  ;;  %v2364_v17 = vadd.f32 %v2363_v14, %v2362_v6  ;;  %v2253_v18 = vpop.f32.mrf.mxu0  ;;  %v3128_v23 = vmax.f32 %v1280_v11, 0.0 }
 0x179   : > { %v2365_v19 = vpop.f32.mrf.mxu1 }
 0x17a   : > { %v1281_v21 = vadd.f32 %v3070_v46, %v1242_v15  ;;  %v967_v22 = vadd.f32 %v2364_v17, %v2252_v16  ;;  %v2254_v25 = vpop.f32.mrf.mxu0  ;;  %v1162_v15 = vpop.permute.xlu0 %1161 }
 0x17b   : > { %v2366_v26 = vpop.f32.mrf.mxu1  ;;  %v2255_v30 = vadd.f32 %v2254_v25, %v2253_v18 }
 0x17c   : > { %v3130_v28 = vmax.f32 %v1281_v21, 0.0  ;;  %v1243_v29 = vmul.f32 %v1142_v20, %v967_v22  ;;  %v2367_v31 = vadd.f32 %v2366_v26, %v2365_v19  ;;  %v2256_v32 = vpop.f32.mrf.mxu0 }
 0x17d   : > { %v2368_v33 = vpop.f32.mrf.mxu1 }
 0x17e   : > { %v2130_v36 = vpack.c.bf16 %v3130_v28, %v3128_v23  ;;  %v970_v38 = vadd.f32 %v2367_v31, %v2255_v30  ;;  %v1282_v39 = vadd.f32 %v3070_v46, %v1243_v29  ;;  %v2257_v40 = vpop.f32.mrf.mxu0  ;;  %v1167_v31 = vpop.permute.xlu1 %1166 }
 0x17f   : > { %v2369_v41 = vpop.f32.mrf.mxu1  ;;  %v2258_v43 = vadd.f32 %v2257_v40, %v2256_v32 }
 0x180   : > { %2182 = vst [vmem:[%s2962_s16 + $0x30] sm:$0xff] %v2130_v36   ;;  %v1244_v42 = vmul.f32 %v1147_v35, %v970_v38  ;;  %v2370_v44 = vadd.f32 %v2369_v41, %v2368_v33  ;;  %v2259_v45 = vpop.f32.mrf.mxu0  ;;  %v3137_v53 = vmax.f32 %v1282_v39, 0.0 }
 0x181   : > { %v2371_v47 = vpop.f32.mrf.mxu1 }
 0x182   : > { %v1283_v50 = vadd.f32 %v3070_v46, %v1244_v42  ;;  %v975_v52 = vadd.f32 %v2370_v44, %v2258_v43  ;;  %v2260_v54 = vpop.f32.mrf.mxu0  ;;  %v1172_v44 = vpop.permute.xlu0 %1171 }
 0x183   : > { %v2372_v55 = vpop.f32.mrf.mxu1  ;;  %v2261_v58 = vadd.f32 %v2260_v54, %v2259_v45 }
 0x184   : > { %v3139_v56 = vmax.f32 %v1283_v50, 0.0  ;;  %v1245_v57 = vmul.f32 %v1152_v49, %v975_v52  ;;  %v2373_v59 = vadd.f32 %v2372_v55, %v2371_v47  ;;  %v2262_v61 = vpop.f32.mrf.mxu0 }
 0x185   : > { %v2374_v62 = vpop.f32.mrf.mxu1 }
 0x186   : > { %v2135_v2 = vpack.c.bf16 %v3139_v56, %v3137_v53  ;;  %v978_v3 = vadd.f32 %v2373_v59, %v2261_v58  ;;  %v1284_v5 = vadd.f32 %v3070_v46, %v1245_v57  ;;  %v2263_v6 = vpop.f32.mrf.mxu0 }
 0x187   : > { %v2375_v7 = vpop.f32.mrf.mxu1  ;;  %v2264_v10 = vadd.f32 %v2263_v6, %v2262_v61 }
 0x188   : > { %2183 = vst [vmem:[%s2962_s16 + $0x38] sm:$0xff] %v2135_v2   ;;  %v1246_v8 = vmul.f32 %v1157_v0, %v978_v3  ;;  %v2376_v11 = vadd.f32 %v2375_v7, %v2374_v62  ;;  %v2265_v13 = vpop.f32.mrf.mxu0  ;;  %v3146_v18 = vmax.f32 %v1284_v5, 0.0  ;;  %v1177_v62 = vpop.permute.xlu1 %1176 }
 0x189   : > { %v2377_v14 = vpop.f32.mrf.mxu1 }
 0x18a   : > { %v1285_v16 = vadd.f32 %v3070_v46, %v1246_v8  ;;  %v983_v17 = vadd.f32 %v2376_v11, %v2264_v10  ;;  %v2266_v19 = vpop.f32.mrf.mxu0 }
 0x18b   : > { %v2378_v20 = vpop.f32.mrf.mxu1  ;;  %v2267_v25 = vadd.f32 %v2266_v19, %v2265_v13 }
 0x18c   : > { %v3148_v21 = vmax.f32 %v1285_v16, 0.0  ;;  %v1247_v22 = vmul.f32 %v1162_v15, %v983_v17  ;;  %v2379_v26 = vadd.f32 %v2378_v20, %v2377_v14  ;;  %v2268_v29 = vpop.f32.mrf.mxu0  ;;  %v1182_v14 = vpop.permute.xlu0 %1181 }
 0x18d   : > { %v2380_v30 = vpop.f32.mrf.mxu1 }
 0x18e   : > { %v2140_v32 = vpack.c.bf16 %v3148_v21, %v3146_v18  ;;  %v986_v33 = vadd.f32 %v2379_v26, %v2267_v25  ;;  %v1286_v35 = vadd.f32 %v3070_v46, %v1247_v22  ;;  %v2269_v36 = vpop.f32.mrf.mxu0 }
 0x18f   : > { %v2381_v38 = vpop.f32.mrf.mxu1  ;;  %v2270_v40 = vadd.f32 %v2269_v36, %v2268_v29 }
 0x190   : > { %2184 = vst [vmem:[%s2962_s16 + $0x40] sm:$0xff] %v2140_v32   ;;  %v1248_v39 = vmul.f32 %v1167_v31, %v986_v33  ;;  %v2382_v41 = vadd.f32 %v2381_v38, %v2380_v30  ;;  %v2271_v42 = vpop.f32.mrf.mxu0  ;;  %v3155_v49 = vmax.f32 %v1286_v35, 0.0  ;;  %v1187_v32 = vpop.permute.xlu1 %1186 }
 0x191   : > { %v2383_v43 = vpop.f32.mrf.mxu1 }
 0x192   : > { %v1287_v45 = vadd.f32 %v3070_v46, %v1248_v39  ;;  %v991_v47 = vadd.f32 %v2382_v41, %v2270_v40  ;;  %v2272_v50 = vpop.f32.mrf.mxu0 }
 0x193   : > { %v2384_v52 = vpop.f32.mrf.mxu1  ;;  %v2273_v57 = vadd.f32 %v2272_v50, %v2271_v42 }
 0x194   : > { %v3157_v54 = vmax.f32 %v1287_v45, 0.0  ;;  %v1249_v55 = vmul.f32 %v1172_v44, %v991_v47  ;;  %v2385_v58 = vadd.f32 %v2384_v52, %v2383_v43  ;;  %v2274_v59 = vpop.f32.mrf.mxu0  ;;  %v1192_v45 = vpop.permute.xlu0 %1191 }
 0x195   : > { %v2386_v61 = vpop.f32.mrf.mxu1 }
 0x196   : > { %v2145_v0 = vpack.c.bf16 %v3157_v54, %v3155_v49  ;;  %v994_v2 = vadd.f32 %v2385_v58, %v2273_v57  ;;  %v1288_v3 = vadd.f32 %v3070_v46, %v1249_v55  ;;  %v2275_v5 = vpop.f32.mrf.mxu0 }
 0x197   : > { %v2387_v6 = vpop.f32.mrf.mxu1  ;;  %v2276_v8 = vadd.f32 %v2275_v5, %v2274_v59 }
 0x198   : > { %2185 = vst [vmem:[%s2962_s16 + $0x48] sm:$0xff] %v2145_v0   ;;  %v1250_v7 = vmul.f32 %v1177_v62, %v994_v2  ;;  %v2388_v10 = vadd.f32 %v2387_v6, %v2386_v61  ;;  %v2277_v11 = vpop.f32.mrf.mxu0  ;;  %v3164_v17 = vmax.f32 %v1288_v3, 0.0  ;;  %v1197_v3 = vpop.permute.xlu1 %1196 }
 0x199   : > { %v2389_v13 = vpop.f32.mrf.mxu1 }
 0x19a   : > { %v1289_v15 = vadd.f32 %v3070_v46, %v1250_v7  ;;  %v999_v16 = vadd.f32 %v2388_v10, %v2276_v8  ;;  %v2278_v19 = vpop.f32.mrf.mxu0 }
 0x19b   : > { %v2390_v20 = vpop.f32.mrf.mxu1  ;;  %v2279_v26 = vadd.f32 %v2278_v19, %v2277_v11  ;;  %v1202_v19 = vpop.permute.xlu0 %1201 }
 0x19c   : > { %v3166_v22 = vmax.f32 %v1289_v15, 0.0  ;;  %v1251_v25 = vmul.f32 %v1182_v14, %v999_v16  ;;  %v2391_v29 = vadd.f32 %v2390_v20, %v2389_v13  ;;  %v2280_v30 = vpop.f32.mrf.mxu0 }
 0x19d   : > { %v2392_v31 = vpop.f32.mrf.mxu1 }
 0x19e   : > { %v2150_v33 = vpack.c.bf16 %v3166_v22, %v3164_v17  ;;  %v1002_v35 = vadd.f32 %v2391_v29, %v2279_v26  ;;  %v1290_v36 = vadd.f32 %v3070_v46, %v1251_v25  ;;  %v2281_v38 = vpop.f32.mrf.mxu0 }
 0x19f   : > { %v2393_v39 = vpop.f32.mrf.mxu1  ;;  %v2282_v41 = vadd.f32 %v2281_v38, %v2280_v30 }
 0x1a0   : > { %2186 = vst [vmem:[%s2962_s16 + $0x50] sm:$0xff] %v2150_v33   ;;  %v1252_v40 = vmul.f32 %v1187_v32, %v1002_v35  ;;  %v2394_v42 = vadd.f32 %v2393_v39, %v2392_v31  ;;  %v2283_v43 = vpop.f32.mrf.mxu0  ;;  %v3173_v52 = vmax.f32 %v1290_v36, 0.0  ;;  %v1207_v39 = vpop.permute.xlu1 %1206 }
 0x1a1   : > { %v2395_v44 = vpop.f32.mrf.mxu1 }
 0x1a2   : > { %v1291_v47 = vadd.f32 %v3070_v46, %v1252_v40  ;;  %v1007_v50 = vadd.f32 %v2394_v42, %v2282_v41  ;;  %v2284_v55 = vpop.f32.mrf.mxu0 }
 0x1a3   : > { %v2396_v57 = vpop.f32.mrf.mxu1  ;;  %v2285_v61 = vadd.f32 %v2284_v55, %v2283_v43 }
 0x1a4   : > { %v3175_v58 = vmax.f32 %v1291_v47, 0.0  ;;  %v1253_v59 = vmul.f32 %v1192_v45, %v1007_v50  ;;  %v2397_v62 = vadd.f32 %v2396_v57, %v2395_v44  ;;  %v2286_v0 = vpop.f32.mrf.mxu0 }
 0x1a5   : > { %v2398_v2 = vpop.f32.mrf.mxu1 }
 0x1a6   : > { %v2155_v5 = vpack.c.bf16 %v3175_v58, %v3173_v52  ;;  %v1010_v6 = vadd.f32 %v2397_v62, %v2285_v61  ;;  %v1292_v7 = vadd.f32 %v3070_v46, %v1253_v59  ;;  %v2287_v8 = vpop.f32.mrf.mxu0  ;;  %v1212_v59 = vpop.permute.xlu0 %1211 }
 0x1a7   : > { %v2399_v10 = vpop.f32.mrf.mxu1  ;;  %v2288_v13 = vadd.f32 %v2287_v8, %v2286_v0 }
 0x1a8   : > { %2187 = vst [vmem:[%s2962_s16 + $0x58] sm:$0xff] %v2155_v5   ;;  %v1254_v11 = vmul.f32 %v1197_v3, %v1010_v6  ;;  %v2400_v14 = vadd.f32 %v2399_v10, %v2398_v2  ;;  %v2289_v15 = vpop.f32.mrf.mxu0  ;;  %v3182_v26 = vmax.f32 %v1292_v7, 0.0 }
 0x1a9   : > { %v2401_v16 = vpop.f32.mrf.mxu1 }
 0x1aa   : > { %v1293_v20 = vadd.f32 %v3070_v46, %v1254_v11  ;;  %v1015_v25 = vadd.f32 %v2400_v14, %v2288_v13  ;;  %v2290_v29 = vpop.f32.mrf.mxu0  ;;  %v1217_v13 = vpop.permute.xlu1 %1216 }
 0x1ab   : > { %v2402_v30 = vpop.f32.mrf.mxu1  ;;  %v2291_v33 = vadd.f32 %v2290_v29, %v2289_v15 }
 0x1ac   : > { %v3184_v31 = vmax.f32 %v1293_v20, 0.0  ;;  %v1255_v32 = vmul.f32 %v1202_v19, %v1015_v25  ;;  %v2403_v35 = vadd.f32 %v2402_v30, %v2401_v16  ;;  %v2292_v36 = vpop.f32.mrf.mxu0 }
 0x1ad   : > { %v2404_v38 = vpop.f32.mrf.mxu1 }
 0x1ae   : > { %v2160_v40 = vpack.c.bf16 %v3184_v31, %v3182_v26  ;;  %v1018_v41 = vadd.f32 %v2403_v35, %v2291_v33  ;;  %v1294_v42 = vadd.f32 %v3070_v46, %v1255_v32  ;;  %v2293_v43 = vpop.f32.mrf.mxu0  ;;  %v1222_v35 = vpop.permute.xlu0 %1221 }
 0x1af   : > { %v2405_v44 = vpop.f32.mrf.mxu1  ;;  %v2294_v47 = vadd.f32 %v2293_v43, %v2292_v36 }
 0x1b0   : > { %2188 = vst [vmem:[%s2962_s16 + $0x60] sm:$0xff] %v2160_v40   ;;  %v1256_v45 = vmul.f32 %v1207_v39, %v1018_v41  ;;  %v2406_v50 = vadd.f32 %v2405_v44, %v2404_v38  ;;  %v2295_v55 = vpop.f32.mrf.mxu0  ;;  %v3191_v0 = vmax.f32 %v1294_v42, 0.0 }
 0x1b1   : > { %v2407_v57 = vpop.f32.mrf.mxu1 }
 0x1b2   : > { %v1295_v61 = vadd.f32 %v3070_v46, %v1256_v45  ;;  %v1023_v62 = vadd.f32 %v2406_v50, %v2294_v47  ;;  %v2296_v2 = vpop.f32.mrf.mxu0 }
 0x1b3   : > { %v2408_v3 = vpop.f32.mrf.mxu1  ;;  %v2297_v7 = vadd.f32 %v2296_v2, %v2295_v55  ;;  %v1227_v55 = vpop.permute.xlu1 %1226 }
 0x1b4   : > { %v3193_v5 = vmax.f32 %v1295_v61, 0.0  ;;  %v1257_v6 = vmul.f32 %v1212_v59, %v1023_v62  ;;  %v2409_v8 = vadd.f32 %v2408_v3, %v2407_v57  ;;  %v2298_v10 = vpop.f32.mrf.mxu0 }
 0x1b5   : > { %v2410_v11 = vpop.f32.mrf.mxu1 }
 0x1b6   : > { %v2165_v14 = vpack.c.bf16 %v3193_v5, %v3191_v0  ;;  %v1026_v15 = vadd.f32 %v2409_v8, %v2297_v7  ;;  %v1296_v16 = vadd.f32 %v3070_v46, %v1257_v6  ;;  %v2299_v19 = vpop.f32.mrf.mxu0 }
 0x1b7   : > { %v2411_v20 = vpop.f32.mrf.mxu1  ;;  %v2300_v29 = vadd.f32 %v2299_v19, %v2298_v10 }
 0x1b8   : > { %2189 = vst [vmem:[%s2962_s16 + $0x68] sm:$0xff] %v2165_v14   ;;  %v1258_v25 = vmul.f32 %v1217_v13, %v1026_v15  ;;  %v2412_v30 = vadd.f32 %v2411_v20, %v2410_v11  ;;  %v2301_v32 = vpop.f32.mrf.mxu0  ;;  %v3200_v39 = vmax.f32 %v1296_v16, 0.0 }
 0x1b9   : > { %v2413_v33 = vpop.f32.mrf.mxu1 }
 0x1ba   : > { %v1297_v36 = vadd.f32 %v3070_v46, %v1258_v25  ;;  %v1031_v38 = vadd.f32 %v2412_v30, %v2300_v29  ;;  %v2302_v40 = vpop.f32.mrf.mxu0 }
 0x1bb   : > { %v2414_v41 = vpop.f32.mrf.mxu1  ;;  %v2303_v44 = vadd.f32 %v2302_v40, %v2301_v32 }
 0x1bc   : > { %v3202_v42 = vmax.f32 %v1297_v36, 0.0  ;;  %v1259_v43 = vmul.f32 %v1222_v35, %v1031_v38  ;;  %v2415_v45 = vadd.f32 %v2414_v41, %v2413_v33 }
 0x1be   : > { %v2170_v47 = vpack.c.bf16 %v3202_v42, %v3200_v39  ;;  %v1034_v50 = vadd.f32 %v2415_v45, %v2303_v44  ;;  %v1298_v57 = vadd.f32 %v3070_v46, %v1259_v43 }
 0x1c0   : > { %2190 = vst [vmem:[%s2962_s16 + $0x70] sm:$0xff] %v2170_v47   ;;  %v1260_v59 = vmul.f32 %v1227_v55, %v1034_v50  ;;  %v3209_v62 = vmax.f32 %v1298_v57, 0.0 }
 0x1c2   : > { %v1299_v61 = vadd.f32 %v3070_v46, %v1260_v59 }
 0x1c4   : > { %v3211_v2 = vmax.f32 %v1299_v61, 0.0  ;;  %1495 = sbr.rel (%p2054_p4) target bundleno = 534 (0x216), region = 48 }
 0x1c6   : > { %v2175_v3 = vpack.c.bf16 %v3211_v2, %v3209_v62 }
 0x1c8   : > { %2191 = vst [vmem:[%s2962_s16 + $0x78] sm:$0xff] %v2175_v3  }
 0x1c9   : > { %v1497_v6 = vadd.f32 %v3076_v4, %v3074_v1 }
 0x1cb   : > { %v1498_v7 = vadd.f32 %v1497_v6, %v3083_v24 }
 0x1cd   : > { %v1499_v8 = vadd.f32 %v1498_v7, %v3085_v27 }
 0x1cf   : > { %v1500_v46 = vadd.f32 %v1499_v8, %v3092_v48 }
 0x1d1   : > { %v1501_v10 = vadd.f32 %v1500_v46, %v3094_v51 }
 0x1d3   : > { %v1502_v11 = vadd.f32 %v1501_v10, %v3101_v9  ;;  %v1496_v10 = vld [vmem:[%s2965_s7] sm:$0x1] }
 0x1d5   : > { %v1503_v13 = vadd.f32 %v1502_v11, %v3103_v12 }
 0x1d7   : > { %v1504_v14 = vadd.f32 %v1503_v13, %v3110_v34 }
 0x1d9   : > { %v1505_v15 = vadd.f32 %v1504_v14, %v3112_v37 }
 0x1db   : > { %v1506_v16 = vadd.f32 %v1505_v15, %v3119_v60 }
 0x1dd   : > { %v1507_v19 = vadd.f32 %v1506_v16, %v3121_v63 }
 0x1df   : > { %v1508_v20 = vadd.f32 %v1507_v19, %v3128_v23 }
 0x1e1   : > { %v1509_v25 = vadd.f32 %v1508_v20, %v3130_v28 }
 0x1e3   : > { %v1510_v29 = vadd.f32 %v1509_v25, %v3137_v53 }
 0x1e5   : > { %v1511_v30 = vadd.f32 %v1510_v29, %v3139_v56 }
 0x1e7   : > { %v1512_v32 = vadd.f32 %v1511_v30, %v3146_v18 }
 0x1e9   : > { %v1513_v33 = vadd.f32 %v1512_v32, %v3148_v21 }
 0x1eb   : > { %v1514_v35 = vadd.f32 %v1513_v33, %v3155_v49 }
 0x1ed   : > { %v1515_v36 = vadd.f32 %v1514_v35, %v3157_v54 }
 0x1ef   : > { %v1516_v38 = vadd.f32 %v1515_v36, %v3164_v17 }
 0x1f1   : > { %v1517_v40 = vadd.f32 %v1516_v38, %v3166_v22 }
 0x1f3   : > { %v1518_v41 = vadd.f32 %v1517_v40, %v3173_v52 }
 0x1f5   : > { %v1519_v43 = vadd.f32 %v1518_v41, %v3175_v58 }
 0x1f7   : > { %v1520_v44 = vadd.f32 %v1519_v43, %v3182_v26 }
 0x1f9   : > { %v1521_v45 = vadd.f32 %v1520_v44, %v3184_v31 }
 0x1fb   : > { %v1522_v47 = vadd.f32 %v1521_v45, %v3191_v0 }
 0x1fd   : > { %v1523_v50 = vadd.f32 %v1522_v47, %v3193_v5 }
 0x1ff   : > { %v1524_v55 = vadd.f32 %v1523_v50, %v3200_v39 }
 0x201   : > { %v1525_v57 = vadd.f32 %v1524_v55, %v3202_v42 }
 0x203   : > { %v1526_v59 = vadd.f32 %v1525_v57, %v3209_v62 }
 0x205   : > { %v1527_v61 = vadd.f32 %v1526_v59, %v3211_v2 }
 0x207   : > { %v1528_v3 = vrot.slane %v1527_v61, 4 }
 0x209   : > { %v1529_v6 = vadd.f32 %v1528_v3, %v1527_v61 }
 0x20b   : > { %v1530_v7 = vrot.slane %v1529_v6, 2 }
 0x20d   : > { %v1531_v8 = vadd.f32 %v1530_v7, %v1529_v6 }
 0x20f   : > { %v1532_v46 = vrot.slane %v1531_v8, 1 }
 0x211   : > { %v1533_v11 = vadd.f32 %v1532_v46, %v1531_v8 }
 0x213   : > { %v1534_v13 = vadd.f32 %v1533_v11, %v1496_v10 }
 0x215   : > { %1535 = vst [vmem:[%s2965_s7] sm:$0x1] %v1534_v13 }
 0x216 PF: > { %p2055_p10 = scmp.ne.s32.totalorder %s2725_s24, 1 }
 0x217   : > { %s2056_s18 = sshll.u32 (!%p2055_p10), %s2725_s24, 8 }
 0x218   : > { %1539 = sbr.rel (%p2055_p10) target bundleno = 628 (0x274), region = 52 }
 0x21d   : > { %v1541_v14 = vlaneseq  ;;  %v3256_v19 = vstv %s2056_s18 }
 0x21f   : > { %v3252_v15 = vshrl.u32 %v1541_v14, 7 }
 0x221   : > { %v1543_v16 = vadd.s32 8, %v3252_v15  ;;  %v1544_v20 = vadd.s32 16, %v3252_v15  ;;  %v1545_v25 = vadd.s32 24, %v3252_v15  ;;  %v1575_v29 = vadd.s32 %v3256_v19, %v3252_v15 }
 0x222   : > { %v1546_v32 = vadd.s32 32, %v3252_v15  ;;  %v1547_v35 = vadd.s32 40, %v3252_v15  ;;  %v1548_v38 = vadd.s32 48, %v3252_v15  ;;  %v1549_v44 = vadd.s32 56, %v3252_v15 }
 0x223   : > { %v1576_v30 = vadd.s32 %v3256_v19, %v1543_v16  ;;  %v1577_v33 = vadd.s32 %v3256_v19, %v1544_v20  ;;  %v1578_v36 = vadd.s32 %v3256_v19, %v1545_v25  ;;  %vm1607_vm0 = vcmp.lt.s32.totalorder %v1575_v29, 300 }
 0x224   : > { %v1579_v40 = vadd.s32 %v3256_v19, %v1546_v32  ;;  %v1703_v41 = vsel %vm1607_vm0, %v3074_v1, 0.0  ;;  %v1580_v45 = vadd.s32 %v3256_v19, %v1547_v35  ;;  %v1550_v50 = vadd.s32 64, %v3252_v15 }
 0x225   : > { %vm1608_vm1 = vcmp.lt.s32.totalorder %v1576_v30, 300  ;;  %vm1609_vm2 = vcmp.lt.s32.totalorder %v1577_v33, 300  ;;  %vm1610_vm3 = vcmp.lt.s32.totalorder %v1578_v36, 300  ;;  %v1581_v55 = vadd.s32 %v3256_v19, %v1548_v38 }
 0x226   : > { %v1704_v43 = vsel %vm1608_vm1, %v3076_v4, 0.0  ;;  %v1705_v47 = vsel %vm1609_vm2, %v3083_v24, 0.0  ;;  %vm1611_vm4 = vcmp.lt.s32.totalorder %v1579_v40, 300  ;;  %v1706_v59 = vsel %vm1610_vm3, %v3085_v27, 0.0 }
 0x227   : > { %v1736_v57 = vadd.f32 %v1704_v43, %v1703_v41  ;;  %v1551_v61 = vadd.s32 72, %v3252_v15  ;;  %v1582_v1 = vadd.s32 %v3256_v19, %v1549_v44  ;;  %vm1612_vm5 = vcmp.lt.s32.totalorder %v1580_v45, 300 }
 0x228   : > { %v1707_v3 = vsel %vm1611_vm4, %v3092_v48, 0.0  ;;  %v1552_v6 = vadd.s32 80, %v3252_v15  ;;  %v1583_v24 = vadd.s32 %v3256_v19, %v1550_v50  ;;  %vm1613_vm6 = vcmp.lt.s32.totalorder %v1581_v55, 300 }
 0x229   : > { %v1737_v4 = vadd.f32 %v1736_v57, %v1705_v47  ;;  %v1708_v8 = vsel %vm1612_vm5, %v3094_v51, 0.0  ;;  %v1553_v46 = vadd.s32 88, %v3252_v15  ;;  %v1584_v27 = vadd.s32 %v3256_v19, %v1551_v61 }
 0x22a   : > { %vm1614_vm7 = vcmp.lt.s32.totalorder %v1582_v1, 300  ;;  %v1709_v11 = vsel %vm1613_vm6, %v3101_v9, 0.0  ;;  %v1554_v13 = vadd.s32 96, %v3252_v15  ;;  %v1585_v48 = vadd.s32 %v3256_v19, %v1552_v6 }
 0x22b   : > { %v1738_v7 = vadd.f32 %v1737_v4, %v1706_v59  ;;  %vm1615_vm8 = vcmp.lt.s32.totalorder %v1583_v24, 300  ;;  %v1710_v16 = vsel %vm1614_vm7, %v3103_v12, 0.0  ;;  %v1555_v20 = vadd.s32 104, %v3252_v15 }
 0x22c   : > { %v1586_v51 = vadd.s32 %v3256_v19, %v1553_v46  ;;  %vm1616_vm9 = vcmp.lt.s32.totalorder %v1584_v27, 300  ;;  %v1711_v29 = vsel %vm1615_vm8, %v3110_v34, 0.0  ;;  %v1556_v30 = vadd.s32 112, %v3252_v15 }
 0x22d   : > { %v1739_v10 = vadd.f32 %v1738_v7, %v1707_v3  ;;  %v1587_v9 = vadd.s32 %v3256_v19, %v1554_v13  ;;  %vm1617_vm10 = vcmp.lt.s32.totalorder %v1585_v48, 300  ;;  %v1712_v33 = vsel %vm1616_vm9, %v3112_v37, 0.0 }
 0x22e   : > { %v1557_v35 = vadd.s32 120, %v3252_v15  ;;  %v1588_v12 = vadd.s32 %v3256_v19, %v1555_v20  ;;  %vm1618_vm11 = vcmp.lt.s32.totalorder %v1586_v51, 300  ;;  %v1713_v38 = vsel %vm1617_vm10, %v3119_v60, 0.0 }
 0x22f   : > { %v1740_v14 = vadd.f32 %v1739_v10, %v1708_v8  ;;  %v1558_v40 = vadd.s32 128, %v3252_v15  ;;  %v1589_v34 = vadd.s32 %v3256_v19, %v1556_v30  ;;  %vm1619_vm12 = vcmp.lt.s32.totalorder %v1587_v9, 300 }
 0x230   : > { %v1714_v43 = vsel %vm1618_vm11, %v3121_v63, 0.0  ;;  %v1559_v44 = vadd.s32 136, %v3252_v15  ;;  %v1590_v37 = vadd.s32 %v3256_v19, %v1557_v35  ;;  %vm1620_vm13 = vcmp.lt.s32.totalorder %v1588_v12, 300 }
 0x231   : > { %v1741_v25 = vadd.f32 %v1740_v14, %v1709_v11  ;;  %v1715_v47 = vsel %vm1619_vm12, %v3128_v23, 0.0  ;;  %v1560_v50 = vadd.s32 144, %v3252_v15  ;;  %v1591_v60 = vadd.s32 %v3256_v19, %v1558_v40 }
 0x232   : > { %vm1621_vm14 = vcmp.lt.s32.totalorder %v1589_v34, 300  ;;  %v1716_v57 = vsel %vm1620_vm13, %v3130_v28, 0.0  ;;  %v1561_v59 = vadd.s32 152, %v3252_v15  ;;  %v1592_v63 = vadd.s32 %v3256_v19, %v1559_v44 }
 0x233   : > { %v1742_v32 = vadd.f32 %v1741_v25, %v1710_v16  ;;  %vm1622_vm15 = vcmp.lt.s32.totalorder %v1590_v37, 300  ;;  %v1717_v1 = vsel %vm1621_vm14, %v3137_v53, 0.0  ;;  %v1562_v4 = vadd.s32 160, %v3252_v15 }
 0x234   : > { %v1593_v23 = vadd.s32 %v3256_v19, %v1560_v50  ;;  %vm1623_vm0 = vcmp.lt.s32.totalorder %v1591_v60, 300  ;;  %v1718_v6 = vsel %vm1622_vm15, %v3139_v56, 0.0  ;;  %v1563_v24 = vadd.s32 168, %v3252_v15 }
 0x235   : > { %v1743_v36 = vadd.f32 %v1742_v32, %v1711_v29  ;;  %v1594_v28 = vadd.s32 %v3256_v19, %v1561_v59  ;;  %vm1624_vm1 = vcmp.lt.s32.totalorder %v1592_v63, 300  ;;  %v1719_v8 = vsel %vm1623_vm0, %v3146_v18, 0.0 }
 0x236   : > { %v1564_v46 = vadd.s32 176, %v3252_v15  ;;  %v1595_v53 = vadd.s32 %v3256_v19, %v1562_v4  ;;  %vm1625_vm2 = vcmp.lt.s32.totalorder %v1593_v23, 300  ;;  %v1720_v10 = vsel %vm1624_vm1, %v3148_v21, 0.0 }
 0x237   : > { %v1744_v41 = vadd.f32 %v1743_v36, %v1712_v33  ;;  %v1565_v11 = vadd.s32 184, %v3252_v15  ;;  %v1596_v56 = vadd.s32 %v3256_v19, %v1563_v24  ;;  %vm1626_vm3 = vcmp.lt.s32.totalorder %v1594_v28, 300 }
 0x238   : > { %v1721_v48 = vsel %vm1625_vm2, %v3155_v49, 0.0  ;;  %v1566_v14 = vadd.s32 192, %v3252_v15  ;;  %v1597_v18 = vadd.s32 %v3256_v19, %v1564_v46  ;;  %vm1627_vm4 = vcmp.lt.s32.totalorder %v1595_v53, 300 }
 0x239   : > { %v1745_v45 = vadd.f32 %v1744_v41, %v1713_v38  ;;  %v1722_v20 = vsel %vm1626_vm3, %v3157_v54, 0.0  ;;  %v1567_v51 = vadd.s32 200, %v3252_v15  ;;  %v1598_v21 = vadd.s32 %v3256_v19, %v1565_v11 }
 0x23a   : > { %vm1628_vm5 = vcmp.lt.s32.totalorder %v1596_v56, 300  ;;  %v1723_v29 = vsel %vm1627_vm4, %v3164_v17, 0.0  ;;  %v1568_v30 = vadd.s32 208, %v3252_v15  ;;  %v1599_v49 = vadd.s32 %v3256_v19, %v1566_v14 }
 0x23b   : > { %v1746_v55 = vadd.f32 %v1745_v45, %v1714_v43  ;;  %vm1629_vm6 = vcmp.lt.s32.totalorder %v1597_v18, 300  ;;  %v1724_v32 = vsel %vm1628_vm5, %v3166_v22, 0.0  ;;  %v1569_v33 = vadd.s32 216, %v3252_v15 }
 0x23c   : > { %v1600_v54 = vadd.s32 %v3256_v19, %v1567_v51  ;;  %vm1630_vm7 = vcmp.lt.s32.totalorder %v1598_v21, 300  ;;  %v1725_v12 = vsel %vm1629_vm6, %v3173_v52, 0.0  ;;  %v1570_v36 = vadd.s32 224, %v3252_v15 }
 0x23d   : > { %v1747_v61 = vadd.f32 %v1746_v55, %v1715_v47  ;;  %v1601_v17 = vadd.s32 %v3256_v19, %v1568_v30  ;;  %vm1631_vm8 = vcmp.lt.s32.totalorder %v1599_v49, 300  ;;  %v1726_v40 = vsel %vm1630_vm7, %v3175_v58, 0.0 }
 0x23e   : > { %v1571_v34 = vadd.s32 232, %v3252_v15  ;;  %v1602_v22 = vadd.s32 %v3256_v19, %v1569_v33  ;;  %vm1632_vm9 = vcmp.lt.s32.totalorder %v1600_v54, 300  ;;  %v1727_v43 = vsel %vm1631_vm8, %v3182_v26, 0.0 }
 0x23f   : > { %v1748_v3 = vadd.f32 %v1747_v61, %v1716_v57  ;;  %v1572_v44 = vadd.s32 240, %v3252_v15  ;;  %v1603_v52 = vadd.s32 %v3256_v19, %v1570_v36  ;;  %vm1633_vm10 = vcmp.lt.s32.totalorder %v1601_v17, 300 }
 0x240   : > { %v1728_v45 = vsel %vm1632_vm9, %v3184_v31, 0.0  ;;  %v1573_v47 = vadd.s32 248, %v3252_v15  ;;  %v1604_v58 = vadd.s32 %v3256_v19, %v1571_v34  ;;  %vm1634_vm11 = vcmp.lt.s32.totalorder %v1602_v22, 300 }
 0x241   : > { %v1749_v7 = vadd.f32 %v1748_v3, %v1717_v1  ;;  %v1729_v60 = vsel %vm1633_vm10, %v3191_v0, 0.0  ;;  %v1605_v55 = vadd.s32 %v3256_v19, %v1572_v44  ;;  %vm1635_vm12 = vcmp.lt.s32.totalorder %v1603_v52, 300 }
 0x242   : > { %v1730_v57 = vsel %vm1634_vm11, %v3193_v5, 0.0  ;;  %v1606_v59 = vadd.s32 %v3256_v19, %v1573_v47  ;;  %vm1636_vm13 = vcmp.lt.s32.totalorder %v1604_v58, 300  ;;  %v1731_v31 = vsel %vm1635_vm12, %v3200_v39, 0.0 }
 0x243   : > { %v1750_v27 = vadd.f32 %v1749_v7, %v1718_v6  ;;  %vm1637_vm14 = vcmp.lt.s32.totalorder %v1605_v55, 300  ;;  %v1732_v61 = vsel %vm1636_vm13, %v3202_v42, 0.0  ;;  %v1735_v7 = vld [vmem:[%s2965_s7] sm:$0x1] }
 0x244   : > { %vm1638_vm15 = vcmp.lt.s32.totalorder %v1606_v59, 300  ;;  %v1733_v1 = vsel %vm1637_vm14, %v3209_v62, 0.0 }
 0x245   : > { %v1751_v13 = vadd.f32 %v1750_v27, %v1719_v8  ;;  %v1734_v23 = vsel %vm1638_vm15, %v3211_v2, 0.0 }
 0x247   : > { %v1752_v16 = vadd.f32 %v1751_v13, %v1720_v10 }
 0x249   : > { %v1753_v25 = vadd.f32 %v1752_v16, %v1721_v48 }
 0x24b   : > { %v1754_v9 = vadd.f32 %v1753_v25, %v1722_v20 }
 0x24d   : > { %v1755_v35 = vadd.f32 %v1754_v9, %v1723_v29 }
 0x24f   : > { %v1756_v38 = vadd.f32 %v1755_v35, %v1724_v32 }
 0x251   : > { %v1757_v41 = vadd.f32 %v1756_v38, %v1725_v12 }
 0x253   : > { %v1758_v37 = vadd.f32 %v1757_v41, %v1726_v40 }
 0x255   : > { %v1759_v50 = vadd.f32 %v1758_v37, %v1727_v43 }
 0x257   : > { %v1760_v26 = vadd.f32 %v1759_v50, %v1728_v45 }
 0x259   : > { %v1761_v63 = vadd.f32 %v1760_v26, %v1729_v60 }
 0x25b   : > { %v1762_v15 = vadd.f32 %v1761_v63, %v1730_v57 }
 0x25d   : > { %v1763_v0 = vadd.f32 %v1762_v15, %v1731_v31 }
 0x25f   : > { %v1764_v4 = vadd.f32 %v1763_v0, %v1732_v61 }
 0x261   : > { %v1765_v5 = vadd.f32 %v1764_v4, %v1733_v1 }
 0x263   : > { %v1766_v3 = vadd.f32 %v1765_v5, %v1734_v23 }
 0x265   : > { %v1767_v19 = vrot.slane %v1766_v3, 4 }
 0x267   : > { %v1768_v6 = vadd.f32 %v1767_v19, %v1766_v3 }
 0x269   : > { %v1769_v24 = vrot.slane %v1768_v6, 2 }
 0x26b   : > { %v1770_v28 = vadd.f32 %v1769_v24, %v1768_v6 }
 0x26d   : > { %v1771_v39 = vrot.slane %v1770_v28, 1 }
 0x26f   : > { %v1772_v8 = vadd.f32 %v1771_v39, %v1770_v28 }
 0x271   : > { %v1773_v46 = vadd.f32 %v1772_v8, %v1735_v7 }
 0x273   : > { %1774 = vst [vmem:[%s2965_s7] sm:$0x1] %v1773_v46 }
 0x274 PF: > { %s2059_s21 = sshll.u32 %s2729_s25, 6  ;;  %s1795_s24 = sshll.u32 %s2962_s16, 4  ;;  %s3358_s24 = int_to_ptr.vmem [resolvable:$true] %s1795_s24 }
 0x275   : > { %s1792_s22 = sadd.s32 %s2059_s21, %s2940_s17  ;;  %s3496_s20 = sand.u32 1, %s2705_s19  }
 0x276   : > { %s2060_s28 = sshll.u32 %s1792_s22, 6  ;;  %s3367_s6 = scalar_lea.sflag [#allocation4], %s3496_s20 }
 0x277   : > { %s3363_s13 = scalar_lea.hbm %s3452_s4, %s2060_s28  ;;  %s2591_s30 = scalar_lea.vmem %s3358_s24, 2048 }
 0x278   : > { %p2592_p11 = scmp.ne.s32.totalorder %s3358_s24, %s2591_s30  ;;  %s2748_s17 = smov [#allocation5]  }
 0x279   : > { %s2595_s12 = sshll.u32 %s2748_s17, 4  ;;  %s2596_s12 = int_to_ptr.vmem [resolvable:$false] %s2595_s12 }
 0x27a   : > { %p2593_p13 = pnand %p2592_p11, %p2873_p12  ;;  %s2597_s14 = scalar_lea.vmem %s2596_s12, 4096 }
 0x27b   : > { %p2598_p3 = scmp.lt.s32.totalorder %s3358_s24, %s2596_s12  ;;  %p2599_p8 = scmp.lt.s32.totalorder %s2597_s14, %s2591_s30 }
 0x27c   : > { %p2594_p0 = pneg %p2593_p13 }
 0x27d   : > { %p2600_p9 = por %p2599_p8, %p2598_p3 }
 0x27f   : > { %p2601_p5 = pnand %p2600_p9, %p2594_p0 }
 0x281   : > { %2604 = shalt.err (!%p2601_p5)
}
 0x282   : > { %s2605_s11 = scalar_lea.hbm %s3363_s13, 2048  ;;  %s2609_s23 = scalar_lea.hbm %s3452_s4, 16384 }
 0x283   : > { %p2606_p6 = scmp.ne.s32.totalorder %s3363_s13, %s2605_s11  ;;  %p2610_p4 = scmp.lt.s32.totalorder %s3363_s13, %s3452_s4 }
 0x284   : > { %p2611_p10 = scmp.lt.s32.totalorder %s2609_s23, %s2605_s11 }
 0x285   : > { %p2607_p7 = pnand %p2606_p6, %p2873_p12 }
 0x286   : > { %p2612_p11 = por %p2611_p10, %p2610_p4 }
 0x287   : > { %p2608_p1 = pneg %p2607_p7 }
 0x289   : > { %p2613_p13 = pnand %p2612_p11, %p2608_p1 }
 0x28b   : > { %2616 = shalt.err (!%p2613_p13)
}
 0x28c   : > { %s2749_s0 = smov 64   ;;  %s2750_s18 = smov 4  }
 0x28d   : > { %2418 = dma.vmem_to_hbm [thread:$0]  (%p2873_p12), %s3358_s24, 2048, %s3363_s13, %s3367_s6, %s2749_s0, %s2749_s0, %s2750_s18  }
 0x28e   : > { %s2061_s21 = sshll.u32 %s2729_s25, 4  ;;  %s1811_s22 = sshll.u32 %s2965_s7, 4  ;;  %s1812_s22 = int_to_ptr.vmem [resolvable:$true] %s1811_s22 }
 0x28f   : > { %s3498_s10 = sld [smem:[#allocation27_spill]]  ;;  %s1781_s30 = scalar_lea.sflag [#allocation7], %s2924_s27 }
 0x290   : > { %s2617_s17 = scalar_lea.vmem %s1812_s22, 16  ;;  %s2751_s12 = smov [#allocation6]  }
 0x291   : > { %p2618_p0 = scmp.ne.s32.totalorder %s1812_s22, %s2617_s17  ;;  %s2621_s14 = sshll.u32 %s2751_s12, 4  ;;  %s2622_s14 = int_to_ptr.vmem [resolvable:$false] %s2621_s14 }
 0x292   : > { %s2623_s11 = scalar_lea.vmem %s2622_s14, 32  ;;  %p2624_p9 = scmp.lt.s32.totalorder %s1812_s22, %s2622_s14 }
 0x293   : > { %p2619_p3 = pnand %p2618_p0, %p2888_p2  ;;  %p2625_p5 = scmp.lt.s32.totalorder %s2623_s11, %s2617_s17 }
 0x295   : > { %s1809_s20 = scalar_lea.hbm %s3498_s10, %s2061_s21  ;;  %p2620_p8 = pneg %p2619_p3 }
 0x296   : > { %p2626_p12 = por %p2625_p5, %p2624_p9 }
 0x298   : > { %p2627_p6 = pnand %p2626_p12, %p2620_p8 }
 0x29a   : > { %2630 = shalt.err (!%p2627_p6)
}
 0x29b   : > { %s2631_s25 = scalar_lea.hbm %s1809_s20, 16  ;;  %s2635_s27 = scalar_lea.hbm %s3498_s10, 64 }
 0x29c   : > { %p2632_p7 = scmp.ne.s32.totalorder %s1809_s20, %s2631_s25  ;;  %p2636_p10 = scmp.lt.s32.totalorder %s1809_s20, %s3498_s10 }
 0x29d   : > { %p2637_p11 = scmp.lt.s32.totalorder %s2635_s27, %s2631_s25 }
 0x29e   : > { %p2633_p1 = pnand %p2632_p7, %p2888_p2 }
 0x29f   : > { %p2638_p13 = por %p2637_p11, %p2636_p10 }
 0x2a0   : > { %p2634_p4 = pneg %p2633_p1 }
 0x2a2   : > { %p2639_p0 = pnand %p2638_p13, %p2634_p4 }
 0x2a4   : > { %2642 = shalt.err (!%p2639_p0)
}
 0x2a5   : > { %2419 = dma.vmem_to_hbm [thread:$0]  (%p2888_p2), %s1812_s22, 16, %s1809_s20, %s1781_s30  }
 0x2a6 PF: > { %s3499_s6 = sld [smem:[#allocation18_spill]] }
 0x2a7   : > { %s3500_s26 = sld [smem:[#allocation11_spill]] }
 0x2a8   : > { %s3501_s9 = sld [smem:[#allocation24_spill]] }
 0x2ac   : > { %p2434_p3 = scmp.ge.s32.totalorder %s3499_s6, 2 }
 0x2ad   : > { %s1823_s23 = sand.u32 1, %s3500_s26  }
 0x2ae   : > { %p3502_p8 = scmp.ne.s32.totalorder %s3501_s9, 0  ;;  %s1824_s8 = scalar_lea.sflag [#allocation4], %s1823_s23 }
 0x2b0   : > { %p2427_p9 = pnand %p2434_p3, %p3502_p8 }
 0x2b2   : > { %p2428_p5 = pneg %p2427_p9 }
 0x2b4   : > { %2692 = dma.done.wait (%p2428_p5), %s1824_s8, 2048  }
 0x2b5   : > { %2694 = vsyncadd (%p2428_p5), %s1824_s8, 4294965248  ;;  %s3503_s16 = sld [smem:[#allocation13_spill]] }
 0x2b6   : > { %s3504_s0 = sld [smem:[#allocation25_spill]] }
 0x2bb   : > { %s1832_s18 = sand.u32 1, %s3503_s16  }
 0x2bc   : > { %p3505_p12 = scmp.ne.s32.totalorder %s3504_s0, 0  ;;  %s1833_s5 = scalar_lea.sflag [#allocation7], %s1832_s18 }
 0x2be   : > { %p2430_p6 = pnand %p2434_p3, %p3505_p12 }
 0x2c0   : > { %p2431_p7 = pneg %p2430_p6 }
 0x2c2   : > { %2696 = dma.done.wait (%p2431_p7), %s1833_s5, 16  }
 0x2c3   : > { %2698 = vsyncadd (%p2431_p7), %s1833_s5, 4294967280  ;;  %s25_s28 = sadd.s32 1, %s3499_s6   ;;  %s3506_s21 = sld [smem:[#allocation12_spill]] }
 0x2c4   : > { %p22_p2 = scmp.ge.s32.totalorder %s25_s28, 10   ;;  %s3507_s20 = sld [smem:[#allocation22_spill]] }
 0x2c5   : > { %s3508_s22 = sld [smem:[#allocation14_spill]]  ;;  %s3515_s18 = smov %s2705_s19 }
 0x2c6   : > { %s3509_s29 = sld [smem:[#allocation15_spill]] }
 0x2c7   : > { %s3510_s23 = sld [smem:[#allocation21_spill]] }
 0x2c8   : > { %s3511_s24 = sld [smem:[#allocation16_spill]]  ;;  %24 = sbr.rel (!%p22_p2) target bundleno = 14 (0xe), region = 119 }
 0x2c9   : > { %s3512_s25 = sld [smem:[#allocation17_spill]]  ;;  %s3516_s19 = smov %s3506_s21 }
 0x2ca   : > { %s3513_s26 = sld [smem:[#allocation19_spill]] }
 0x2cb   : > { %s3514_s27 = sld [smem:[#allocation20_spill]]  ;;  %s3517_s21 = smov %s3508_s22 }
 0x2cc   : > { %s3518_s22 = smov %s3509_s29 }
 0x2cd   :  { %1837 = vsyncpa [#allocation3], 1 }
 0x2ce   :  { %1839 = vsyncpa [#allocation3 + $0x1], 1 }
 0x2cf   :  { %1840 = vsyncpa [#allocation4], 1 }
 0x2d0   :  { %1842 = vsyncpa [#allocation4 + $0x1], 1 }
 0x2d1   :  { %1843 = vsyncpa [#allocation7], 1 }
 0x2d2   :  { %1845 = vsyncpa [#allocation7 + $0x1], 1 }

</bundles_post_ra>
